<compile_context>
chip_gen: v5e
topology: v5e:2x2
jax: 0.10.0
libtpu: 0.0.40
codegen_flags: <defaults>
</compile_context>

<pallas_src>
import math
import functools
import numpy as np

import jax
import jax.numpy as jnp
from jax import lax
from jax.experimental import pallas as pl
from jax.experimental.pallas import tpu as pltpu


# -------------------- small, shape-consistent config --------------------
class Config:
    hidden_size = 128
    intermediate_size = 256
    num_attention_heads = 4
    num_key_value_heads = 2
    head_dim = 32                 # hidden_size // num_attention_heads
    rms_norm_eps = 1e-5
    rope_theta = 10000.0
    sliding_window = 4
    attention_dropout = 0.0       # identity at eval time


# Tile caps sized so double-buffered tiles stay well under the smallest
# scoped-VMEM budget across v5e / v6e / v7x (v7x: 64 MiB physical VMEM).
_TM_CAP = 256      # rows (B*S)
_TN_CAP = 512      # output lanes
_TK_CAP = 1024     # contraction (K-tiled matmuls only)


def _tile(dim, cap):
    """Largest tile <= cap that evenly divides `dim` (full dim if it fits)."""
    if dim <= cap:
        return dim
    start = cap - (cap % 128)
    for t in range(start, 0, -128):          # prefer lane-aligned tiles
        if dim % t == 0:
            return t
    for t in range(cap, 0, -1):
        if dim % t == 0:
            return t
    return dim


# -------------------- Pallas kernels --------------------
def _rmsnorm_matmul_kernel(x_ref, g_ref, w_ref, o_ref, *, eps):
    """out = RMSNorm(x; g) @ w   (norm computed in f32, MXU fed in x dtype)."""
    x = x_ref[...].astype(jnp.float32)                      # (tm, K)
    var = jnp.mean(x * x, axis=-1, keepdims=True)
    xn = (x * lax.rsqrt(var + eps)).astype(x_ref.dtype) * g_ref[...]
    o_ref[...] = jnp.dot(xn.astype(x_ref.dtype), w_ref[...],
                         preferred_element_type=jnp.float32).astype(o_ref.dtype)


def _rmsnorm_gateup_kernel(x_ref, g_ref, wg_ref, wu_ref, o_ref, *, eps):
    """out = SiLU(RMSNorm(x) @ wg) * (RMSNorm(x) @ wu)  (f32 intermediates)."""
    x = x_ref[...].astype(jnp.float32)
    var = jnp.mean(x * x, axis=-1, keepdims=True)
    xn = ((x * lax.rsqrt(var + eps)).astype(x_ref.dtype) * g_ref[...]
          ).astype(x_ref.dtype)
    gate = jnp.dot(xn, wg_ref[...], preferred_element_type=jnp.float32)
    up = jnp.dot(xn, wu_ref[...], preferred_element_type=jnp.float32)
    h = (gate * jax.nn.sigmoid(gate)) * up                  # SiLU(gate) * up
    o_ref[...] = h.astype(o_ref.dtype)


def _matmul_residual_kernel(x_ref, w_ref, r_ref, o_ref, acc_ref):
    """out = residual + x @ w, K-tiled with an f32 VMEM accumulator."""
    @pl.when(pl.program_id(2) == 0)
    def _init():
        acc_ref[...] = jnp.zeros_like(acc_ref)

    acc_ref[...] += jnp.dot(x_ref[...], w_ref[...],
                            preferred_element_type=jnp.float32)

    @pl.when(pl.program_id(2) == pl.num_programs(2) - 1)
    def _finalize():
        o_ref[...] = (acc_ref[...] + r_ref[...].astype(jnp.float32)
                      ).astype(o_ref.dtype)


def _attn_kernel(*refs, nH, nKV, D, window, scale, has_mask):
    """Per-batch attention over all heads; consumes the fused QKV slab."""
    if has_mask:
        qkv_ref, cos_ref, sin_ref, mask_ref, o_ref = refs
    else:
        qkv_ref, cos_ref, sin_ref, o_ref = refs

    n_rep = nH // nKV
    Nq = nH * D
    Nkv = nKV * D
    S = qkv_ref.shape[1]
    half = D // 2
    in_dtype = o_ref.dtype

    cos = cos_ref[0].astype(jnp.float32)                    # (S, D)
    sin = sin_ref[0].astype(jnp.float32)

    # Hoisted (per kernel invocation, not per head): rotate_half sign mask and
    # the sliding-window / causal mask.
    lane = lax.broadcasted_iota(jnp.int32, (S, D), 1)
    sign = jnp.where(lane < half, -1.0, 1.0).astype(jnp.float32)
    qi = lax.broadcasted_iota(jnp.int32, (S, S), 0)
    kj = lax.broadcasted_iota(jnp.int32, (S, S), 1)
    allowed = (kj <= qi) & (kj >= qi - (window - 1))

    if has_mask:
        add_mask = mask_ref[0, 0].astype(jnp.float32)        # (S, S)

    def rope(x):  # x: (S, D) f32
        rot = pltpu.roll(x, shift=half, axis=1) * sign
        return x * cos + rot * sin

    # Pre-rotate K once per KV head (shared by n_rep query heads).
    k_rot, v_heads = [], []
    for kvh in range(nKV):
        k_h = qkv_ref[0, :, Nq + kvh * D: Nq + (kvh + 1) * D].astype(jnp.float32)
        k_rot.append(rope(k_h).astype(in_dtype))
        v_heads.append(qkv_ref[0, :, Nq + Nkv + kvh * D: Nq + Nkv + (kvh + 1) * D])

    outs = []
    for h in range(nH):
        q_h = qkv_ref[0, :, h * D:(h + 1) * D].astype(jnp.float32)
        q_h = rope(q_h).astype(in_dtype)                     # MXU input in x dtype
        kvh = h // n_rep

        s = jnp.einsum("qd,kd->qk", q_h, k_rot[kvh],
                       preferred_element_type=jnp.float32) * scale
        if has_mask:
            s = s + add_mask
        s = jnp.where(allowed, s, -jnp.inf)

        m = jnp.max(s, axis=-1, keepdims=True)               # fp32 softmax
        e = jnp.exp(s - m)
        denom = jnp.sum(e, axis=-1, keepdims=True)
        p = e * pl.reciprocal(denom, approx=True)            # EUP reciprocal

        outs.append(jnp.dot(p.astype(v_heads[kvh].dtype), v_heads[kvh],
                            preferred_element_type=jnp.float32).astype(in_dtype))

    # Single lane-dense (S, nH*D) store.
    o_ref[0] = jnp.concatenate(outs, axis=-1)


# -------------------- pallas_call wrappers --------------------
def _matmul_residual(x2d, w, resid):
    M, K = x2d.shape
    N = w.shape[1]
    tm, tn, tk = _tile(M, _TM_CAP), _tile(N, _TN_CAP), _tile(K, _TK_CAP)
    return pl.pallas_call(
        _matmul_residual_kernel,
        grid=(M // tm, N // tn, K // tk),
        in_specs=[
            pl.BlockSpec((tm, tk), lambda i, j, k: (i, k)),
            pl.BlockSpec((tk, tn), lambda i, j, k: (k, j)),
            pl.BlockSpec((tm, tn), lambda i, j, k: (i, j)),
        ],
        out_specs=pl.BlockSpec((tm, tn), lambda i, j, k: (i, j)),
        out_shape=jax.ShapeDtypeStruct((M, N), x2d.dtype),
        scratch_shapes=[pltpu.VMEM((tm, tn), jnp.float32)],
        compiler_params=pltpu.CompilerParams(
            dimension_semantics=("parallel", "parallel", "arbitrary")),
    )(x2d, w, resid)


def decoder_layer(params, cfg, hidden_states, attention_mask=None,
                  position_ids=None):
    B, S, H = hidden_states.shape
    nH, nKV, D = cfg.num_attention_heads, cfg.num_key_value_heads, cfg.head_dim
    I = cfg.intermediate_size
    Nq, Nkv = nH * D, nKV * D
    Ntot = Nq + 2 * Nkv
    dtype = hidden_states.dtype
    M = B * S

    x2d = hidden_states.reshape(M, H)

    # ---- Kernel 1: fused RMSNorm + QKV projection (one activation read) ----
    # NOTE: in a real model the concatenated (H, Ntot) weight would be packed
    # once at load time; here it is a cheap one-off transform inside the jit.
    w_qkv = jnp.concatenate([params["wq"].T, params["wk"].T, params["wv"].T],
                            axis=1)
    tm = _tile(M, _TM_CAP)
    tn = _tile(Ntot, _TN_CAP)
    qkv = pl.pallas_call(
        functools.partial(_rmsnorm_matmul_kernel, eps=cfg.rms_norm_eps),
        grid=(M // tm, Ntot // tn),
        in_specs=[
            pl.BlockSpec((tm, H), lambda i, j: (i, 0)),
            pl.BlockSpec((1, H), lambda i, j: (0, 0)),
            pl.BlockSpec((H, tn), lambda i, j: (0, j)),
        ],
        out_specs=pl.BlockSpec((tm, tn), lambda i, j: (i, j)),
        out_shape=jax.ShapeDtypeStruct((M, Ntot), dtype),
        compiler_params=pltpu.CompilerParams(
            dimension_semantics=("parallel", "parallel")),
    )(x2d, params["ln1"].reshape(1, H), w_qkv)
    qkv = qkv.reshape(B, S, Ntot)        # layout-preserving, no transpose

    # ---- RoPE tables (batch-shared when position_ids is default) ----
    inv_freq = 1.0 / (cfg.rope_theta **
                      (jnp.arange(0, D, 2, dtype=jnp.float32) / D))
    t = jnp.arange(S, dtype=jnp.float32)
    freqs = jnp.einsum("i,j->ij", t, inv_freq)
    emb = jnp.concatenate([freqs, freqs], axis=-1)           # (S, D)
    cos_tab, sin_tab = jnp.cos(emb), jnp.sin(emb)
    if position_ids is None:
        cos, sin = cos_tab[None], sin_tab[None]              # (1, S, D) shared
        cs_map = lambda b: (0, 0, 0)
    else:
        cos, sin = cos_tab[position_ids], sin_tab[position_ids]  # (B, S, D)
        cs_map = lambda b: (b, 0, 0)

    # ---- Kernel 2: attention, grid over batch, heads packed per block ----
    has_mask = attention_mask is not None
    in_specs = [
        pl.BlockSpec((1, S, Ntot), lambda b: (b, 0, 0)),     # fused q|k|v slab
        pl.BlockSpec((1, S, D), cs_map),                     # cos
        pl.BlockSpec((1, S, D), cs_map),                     # sin
    ]
    inputs = [qkv, cos, sin]
    if has_mask:
        in_specs.append(pl.BlockSpec((1, 1, S, S), lambda b: (b, 0, 0, 0)))
        inputs.append(attention_mask)

    attn = pl.pallas_call(
        functools.partial(_attn_kernel, nH=nH, nKV=nKV, D=D,
                          window=cfg.sliding_window,
                          scale=1.0 / math.sqrt(D), has_mask=has_mask),
        grid=(B,),
        in_specs=in_specs,
        out_specs=pl.BlockSpec((1, S, Nq), lambda b: (b, 0, 0)),
        out_shape=jax.ShapeDtypeStruct((B, S, Nq), dtype),
        compiler_params=pltpu.CompilerParams(
            dimension_semantics=("parallel",)),
    )(*inputs)

    # ---- Kernel 3: o-proj fused with residual add ----
    hidden1 = _matmul_residual(attn.reshape(M, Nq), params["wo"].T, x2d)

    # ---- Kernel 4: fused post-attention RMSNorm + gate/up + SiLU*up ----
    tm = _tile(M, _TM_CAP)
    tn_i = _tile(I, _TN_CAP)
    h_mid = pl.pallas_call(
        functools.partial(_rmsnorm_gateup_kernel, eps=cfg.rms_norm_eps),
        grid=(M // tm, I // tn_i),
        in_specs=[
            pl.BlockSpec((tm, H), lambda i, j: (i, 0)),
            pl.BlockSpec((1, H), lambda i, j: (0, 0)),
            pl.BlockSpec((H, tn_i), lambda i, j: (0, j)),
            pl.BlockSpec((H, tn_i), lambda i, j: (0, j)),
        ],
        out_specs=pl.BlockSpec((tm, tn_i), lambda i, j: (i, j)),
        out_shape=jax.ShapeDtypeStruct((M, I), dtype),
        compiler_params=pltpu.CompilerParams(
            dimension_semantics=("parallel", "parallel")),
    )(hidden1, params["ln2"].reshape(1, H), params["wg"].T, params["wu"].T)

    # ---- Kernel 5: down-proj fused with residual add ----
    out2d = _matmul_residual(h_mid, params["wd"].T, hidden1)
    return out2d.reshape(B, S, H)
    # TODO(synk): past_key_value / use_cache KV-cache path and output_attentions
    # are not implemented (not exercised by the eval forward being tested).


# -------------------- pure-JAX reference (correctness check) --------------------
def reference_layer(params, cfg, hidden_states, attention_mask=None,
                    position_ids=None):
    B, S, H = hidden_states.shape
    nH, nKV, D = cfg.num_attention_heads, cfg.num_key_value_heads, cfg.head_dim
    n_rep = nH // nKV
    if position_ids is None:
        position_ids = jnp.broadcast_to(jnp.arange(S)[None, :], (B, S))
    if attention_mask is None:
        attention_mask = jnp.zeros((B, 1, S, S), hidden_states.dtype)

    def rms(x, w):
        xf = x.astype(jnp.float32)
        var = jnp.mean(xf * xf, -1, keepdims=True)
        return w * (xf * lax.rsqrt(var + cfg.rms_norm_eps)).astype(x.dtype)

    residual = hidden_states
    x = rms(hidden_states, params["ln1"])
    q = (x @ params["wq"].T).reshape(B, S, nH, D).transpose(0, 2, 1, 3)
    k = (x @ params["wk"].T).reshape(B, S, nKV, D).transpose(0, 2, 1, 3)
    v = (x @ params["wv"].T).reshape(B, S, nKV, D).transpose(0, 2, 1, 3)

    inv_freq = 1.0 / (cfg.rope_theta **
                      (jnp.arange(0, D, 2, dtype=jnp.float32) / D))
    emb = jnp.concatenate(
        [jnp.einsum("i,j->ij", jnp.arange(S, dtype=jnp.float32), inv_freq)] * 2,
        axis=-1)
    cos = jnp.cos(emb)[position_ids][:, None]    # (B, 1, S, D)
    sin = jnp.sin(emb)[position_ids][:, None]

    def rotate_half(t):
        return jnp.concatenate([-t[..., D // 2:], t[..., :D // 2]], axis=-1)

    q = q * cos + rotate_half(q) * sin
    k = k * cos + rotate_half(k) * sin
    k = jnp.repeat(k, n_rep, axis=1)
    v = jnp.repeat(v, n_rep, axis=1)

    s = jnp.einsum("bhqd,bhkd->bhqk", q, k) / math.sqrt(D)
    s = s + attention_mask
    i = jnp.arange(S)[:, None]
    j = jnp.arange(S)[None, :]
    allowed = (j <= i) & (j >= i - (cfg.sliding_window - 1))
    s = jnp.where(allowed, s, -jnp.inf)
    p = jax.nn.softmax(s.astype(jnp.float32), axis=-1).astype(q.dtype)
    attn = jnp.einsum("bhqk,bhkd->bhqd", p, v)
    attn = attn.transpose(0, 2, 1, 3).reshape(B, S, nH * D)
    hidden = residual + attn @ params["wo"].T

    residual = hidden
    x = rms(hidden, params["ln2"])
    g = x @ params["wg"].T
    u = x @ params["wu"].T
    mlp = ((g * jax.nn.sigmoid(g)) * u) @ params["wd"].T
    return residual + mlp


# -------------------- deterministic parameter init --------------------
def init_params(key, cfg):
    H, I = cfg.hidden_size, cfg.intermediate_size
    nH, nKV, D = cfg.num_attention_heads, cfg.num_key_value_heads, cfg.head_dim
    std = 0.02
    ks = jax.random.split(key, 7)

    def w(k, shape):  # PyTorch nn.Linear weight layout: (out_features, in_features)
        return jax.random.normal(k, shape, jnp.float32) * std

    return {
        "wq": w(ks[0], (nH * D, H)),
        "wk": w(ks[1], (nKV * D, H)),
        "wv": w(ks[2], (nKV * D, H)),
        "wo": w(ks[3], (H, nH * D)),
        "wg": w(ks[4], (I, H)),
        "wu": w(ks[5], (I, H)),
        "wd": w(ks[6], (H, I)),
        "ln1": jnp.ones((H,), jnp.float32),   # RMSNorm init = ones
        "ln2": jnp.ones((H,), jnp.float32),
    }


if __name__ == "__main__":
    cfg = Config()
    key = jax.random.PRNGKey(0)
    kp, kx = jax.random.split(key)
    params = init_params(kp, cfg)

    B, S = 2, 8
    hidden_states = jax.random.normal(kx, (B, S, cfg.hidden_size), jnp.float32)

    fwd = jax.jit(lambda p, h: decoder_layer(p, cfg, h))
    out = fwd(params, hidden_states)
    out = jax.block_until_ready(out)

    ref = reference_layer(params, cfg, hidden_states)
    np.testing.assert_allclose(np.asarray(out), np.asarray(ref),
                               rtol=1e-2, atol=1e-2)
    print("KERNEL_OK")
</pallas_src>

<mosaic_0001>
module attributes {stable_mosaic.version = 11 : i64} {
  func.func @_rmsnorm_matmul_kernel(%arg0: i32, %arg1: i32, %arg2: memref<16x128xf32, #tpu.memory_space<vmem>>, %arg3: memref<1x128xf32, #tpu.memory_space<vmem>>, %arg4: memref<128x256xf32, #tpu.memory_space<vmem>>, %arg5: memref<16x256xf32, #tpu.memory_space<vmem>>) attributes {dimension_semantics = [#tpu.dimension_semantics<parallel>, #tpu.dimension_semantics<parallel>], iteration_bounds = array<i64: 1, 1>, scalar_prefetch = 0 : i64, scratch_operands = 0 : i64, tpu.core_type = #tpu.core_type<tc>, window_params = [{transform_indices = @transform_0, window_bounds = array<i64: 16, 128>}, {pipeline_mode = #tpu.pipeline_mode<synchronous>, transform_indices = @transform_1, window_bounds = array<i64: 1, 128>}, {transform_indices = @transform_2, window_bounds = array<i64: 128, 256>}, {transform_indices = @transform_3, window_bounds = array<i64: 16, 256>}]} {
    %c0 = arith.constant 0 : index
    %c0_0 = arith.constant 0 : index
    %0 = vector.load %arg2[%c0, %c0_0] : memref<16x128xf32, #tpu.memory_space<vmem>>, vector<16x128xf32>
    %1 = arith.mulf %0, %0 : vector<16x128xf32>
    %cst = arith.constant dense<0.000000e+00> : vector<16xf32>
    %2 = vector.multi_reduction <add>, %1, %cst [1] : vector<16x128xf32> to vector<16xf32>
    %3 = vector.shape_cast %2 : vector<16xf32> to vector<16x1xf32>
    %cst_1 = arith.constant 1.280000e+02 : f32
    %4 = vector.broadcast %cst_1 : f32 to vector<16x1xf32>
    %5 = arith.divf %3, %4 : vector<16x1xf32>
    %cst_2 = arith.constant 9.99999974E-6 : f32
    %6 = vector.broadcast %cst_2 : f32 to vector<16x1xf32>
    %7 = arith.addf %5, %6 : vector<16x1xf32>
    %8 = math.rsqrt %7 : vector<16x1xf32>
    %9 = vector.broadcast %8 : vector<16x1xf32> to vector<16x128xf32>
    %10 = arith.mulf %0, %9 : vector<16x128xf32>
    %c0_3 = arith.constant 0 : index
    %c0_4 = arith.constant 0 : index
    %11 = vector.load %arg3[%c0_3, %c0_4] : memref<1x128xf32, #tpu.memory_space<vmem>>, vector<1x128xf32>
    %12 = vector.broadcast %11 : vector<1x128xf32> to vector<16x128xf32>
    %13 = arith.mulf %10, %12 : vector<16x128xf32>
    %c0_5 = arith.constant 0 : index
    %c0_6 = arith.constant 0 : index
    %14 = vector.load %arg4[%c0_5, %c0_6] : memref<128x256xf32, #tpu.memory_space<vmem>>, vector<128x256xf32>
    %cst_7 = arith.constant dense<0.000000e+00> : vector<16x256xf32>
    %15 = tpu.matmul %13, %14, %cst_7 {dimension_numbers = #tpu.dot_dimension_numbers<[1], [0], [0], [1], [0, 0, 1, 1], [], []>} : vector<16x128xf32>, vector<128x256xf32>, vector<16x256xf32> -> vector<16x256xf32>
    %c0_8 = arith.constant 0 : index
    %c0_9 = arith.constant 0 : index
    %16 = vector.load %arg5[%c0_8, %c0_9] : memref<16x256xf32, #tpu.memory_space<vmem>>, vector<16x256xf32>
    tpu.vector_store %arg5[%c0_8, %c0_9], %15 {strides = array<i32>} : memref<16x256xf32, #tpu.memory_space<vmem>>, vector<16x256xf32>,
    return
  }
  func.func @transform_0(%arg0: i32, %arg1: i32) -> (i32, i32) {
    %c0_i32 = arith.constant 0 : i32
    %c0_i32_0 = arith.constant 0 : i32
    return %arg0, %c0_i32 : i32, i32
  }
  func.func @transform_1(%arg0: i32, %arg1: i32) -> (i32, i32) {
    %c0_i32 = arith.constant 0 : i32
    %c0_i32_0 = arith.constant 0 : i32
    %c0_i32_1 = arith.constant 0 : i32
    return %c0_i32, %c0_i32_0 : i32, i32
  }
  func.func @transform_2(%arg0: i32, %arg1: i32) -> (i32, i32) {
    %c0_i32 = arith.constant 0 : i32
    %c0_i32_0 = arith.constant 0 : i32
    return %c0_i32, %arg1 : i32, i32
  }
  func.func @transform_3(%arg0: i32, %arg1: i32) -> (i32, i32) {
    %c0_i32 = arith.constant 0 : i32
    return %arg0, %arg1 : i32, i32
  }
}

module attributes {stable_mosaic.version = 11 : i64} {
  func.func @_matmul_residual_kernel(%arg0: i32, %arg1: i32, %arg2: i32, %arg3: memref<16x128xf32, #tpu.memory_space<vmem>>, %arg4: memref<128x128xf32, #tpu.memory_space<vmem>>, %arg5: memref<16x128xf32, #tpu.memory_space<vmem>>, %arg6: memref<16x128xf32, #tpu.memory_space<vmem>>, %arg7: memref<16x128xf32, #tpu.memory_space<vmem>>) attributes {dimension_semantics = [#tpu.dimension_semantics<parallel>, #tpu.dimension_semantics<parallel>, #tpu.dimension_semantics<arbitrary>], iteration_bounds = array<i64: 1, 1, 1>, scalar_prefetch = 0 : i64, scratch_operands = 1 : i64, tpu.core_type = #tpu.core_type<tc>, window_params = [{transform_indices = @transform_0, window_bounds = array<i64: 16, 128>}, {transform_indices = @transform_1, window_bounds = array<i64: 128, 128>}, {transform_indices = @transform_2, window_bounds = array<i64: 16, 128>}, {transform_indices = @transform_3, window_bounds = array<i64: 16, 128>}]} {
    %c0_i32 = arith.constant 0 : i32
    %0 = arith.cmpi eq, %arg2, %c0_i32 : i32
    %1 = arith.extui %0 : i1 to i32
    %c0_i32_0 = arith.constant 0 : i32
    %2 = arith.cmpi ne, %1, %c0_i32_0 : i32
    scf.if %2 {
      %cst_10 = arith.constant 0.000000e+00 : f32
      %12 = vector.broadcast %cst_10 : f32 to vector<16x128xf32>
      %c0_11 = arith.constant 0 : index
      %c0_12 = arith.constant 0 : index
      %13 = vector.load %arg7[%c0_11, %c0_12] : memref<16x128xf32, #tpu.memory_space<vmem>>, vector<16x128xf32>
      tpu.vector_store %arg7[%c0_11, %c0_12], %12 {strides = array<i32>} : memref<16x128xf32, #tpu.memory_space<vmem>>, vector<16x128xf32>,
    } else {
    }
    %c0 = arith.constant 0 : index
    %c0_1 = arith.constant 0 : index
    %3 = vector.load %arg7[%c0, %c0_1] : memref<16x128xf32, #tpu.memory_space<vmem>>, vector<16x128xf32>
    %c0_2 = arith.constant 0 : index
    %c0_3 = arith.constant 0 : index
    %4 = vector.load %arg3[%c0_2, %c0_3] : memref<16x128xf32, #tpu.memory_space<vmem>>, vector<16x128xf32>
    %c0_4 = arith.constant 0 : index
    %c0_5 = arith.constant 0 : index
    %5 = vector.load %arg4[%c0_4, %c0_5] : memref<128x128xf32, #tpu.memory_space<vmem>>, vector<128x128xf32>
    %cst = arith.constant dense<0.000000e+00> : vector<16x128xf32>
    %6 = tpu.matmul %4, %5, %cst {dimension_numbers = #tpu.dot_dimension_numbers<[1], [0], [0], [1], [0, 0, 1, 1], [], []>} : vector<16x128xf32>, vector<128x128xf32>, vector<16x128xf32> -> vector<16x128xf32>
    %7 = arith.addf %3, %6 : vector<16x128xf32>
    %c0_6 = arith.constant 0 : index
    %c0_7 = arith.constant 0 : index
    %8 = vector.load %arg7[%c0_6, %c0_7] : memref<16x128xf32, #tpu.memory_space<vmem>>, vector<16x128xf32>
    tpu.vector_store %arg7[%c0_6, %c0_7], %7 {strides = array<i32>} : memref<16x128xf32, #tpu.memory_space<vmem>>, vector<16x128xf32>,
    %c0_i32_8 = arith.constant 0 : i32
    %9 = arith.cmpi eq, %arg2, %c0_i32_8 : i32
    %10 = arith.extui %9 : i1 to i32
    %c0_i32_9 = arith.constant 0 : i32
    %11 = arith.cmpi ne, %10, %c0_i32_9 : i32
    scf.if %11 {
      %c0_10 = arith.constant 0 : index
      %c0_11 = arith.constant 0 : index
      %12 = vector.load %arg7[%c0_10, %c0_11] : memref<16x128xf32, #tpu.memory_space<vmem>>, vector<16x128xf32>
      %c0_12 = arith.constant 0 : index
      %c0_13 = arith.constant 0 : index
      %13 = vector.load %arg5[%c0_12, %c0_13] : memref<16x128xf32, #tpu.memory_space<vmem>>, vector<16x128xf32>
      %14 = arith.addf %12, %13 : vector<16x128xf32>
      %c0_14 = arith.constant 0 : index
      %c0_15 = arith.constant 0 : index
      %15 = vector.load %arg6[%c0_14, %c0_15] : memref<16x128xf32, #tpu.memory_space<vmem>>, vector<16x128xf32>
      tpu.vector_store %arg6[%c0_14, %c0_15], %14 {strides = array<i32>} : memref<16x128xf32, #tpu.memory_space<vmem>>, vector<16x128xf32>,
    } else {
    }
    return
  }
  func.func @transform_0(%arg0: i32, %arg1: i32, %arg2: i32) -> (i32, i32) {
    %c0_i32 = arith.constant 0 : i32
    return %arg0, %arg2 : i32, i32
  }
  func.func @transform_1(%arg0: i32, %arg1: i32, %arg2: i32) -> (i32, i32) {
    %c0_i32 = arith.constant 0 : i32
    return %arg2, %arg1 : i32, i32
  }
  func.func @transform_2(%arg0: i32, %arg1: i32, %arg2: i32) -> (i32, i32) {
    %c0_i32 = arith.constant 0 : i32
    return %arg0, %arg1 : i32, i32
  }
  func.func @transform_3(%arg0: i32, %arg1: i32, %arg2: i32) -> (i32, i32) {
    %c0_i32 = arith.constant 0 : i32
    return %arg0, %arg1 : i32, i32
  }
}

module attributes {stable_mosaic.version = 11 : i64} {
  func.func @_attn_kernel(%arg0: i32, %arg1: memref<1x8x256xf32, #tpu.memory_space<vmem>>, %arg2: memref<1x8x32xf32, #tpu.memory_space<vmem>>, %arg3: memref<1x8x32xf32, #tpu.memory_space<vmem>>, %arg4: memref<1x8x128xf32, #tpu.memory_space<vmem>>) attributes {dimension_semantics = [#tpu.dimension_semantics<parallel>], iteration_bounds = array<i64: 2>, scalar_prefetch = 0 : i64, scratch_operands = 0 : i64, tpu.core_type = #tpu.core_type<tc>, window_params = [{transform_indices = @transform_0, window_bounds = array<i64: 1, 8, 256>}, {pipeline_mode = #tpu.pipeline_mode<synchronous>, transform_indices = @transform_1, window_bounds = array<i64: 1, 8, 32>}, {pipeline_mode = #tpu.pipeline_mode<synchronous>, transform_indices = @transform_2, window_bounds = array<i64: 1, 8, 32>}, {transform_indices = @transform_3, window_bounds = array<i64: 1, 8, 128>}]} {
    %c0 = arith.constant 0 : index
    %c0_0 = arith.constant 0 : index
    %c0_1 = arith.constant 0 : index
    %0 = vector.load %arg2[%c0, %c0_0, %c0_1] : memref<1x8x32xf32, #tpu.memory_space<vmem>>, vector<1x8x32xf32>
    %1 = vector.shape_cast %0 : vector<1x8x32xf32> to vector<8x32xf32>
    %c0_2 = arith.constant 0 : index
    %c0_3 = arith.constant 0 : index
    %c0_4 = arith.constant 0 : index
    %2 = vector.load %arg3[%c0_2, %c0_3, %c0_4] : memref<1x8x32xf32, #tpu.memory_space<vmem>>, vector<1x8x32xf32>
    %3 = vector.shape_cast %2 : vector<1x8x32xf32> to vector<8x32xf32>
    %4 = tpu.iota {dimensions = array<i32: 1>} : vector<8x32xi32>
    %c16_i32 = arith.constant 16 : i32
    %5 = vector.broadcast %c16_i32 : i32 to vector<8x32xi32>
    %6 = arith.cmpi slt, %4, %5 : vector<8x32xi32>
    %cst = arith.constant -1.000000e+00 : f32
    %cst_5 = arith.constant 1.000000e+00 : f32
    %7 = vector.broadcast %cst : f32 to vector<8x32xf32>
    %8 = vector.broadcast %cst_5 : f32 to vector<8x32xf32>
    %9 = arith.select %6, %7, %8 : vector<8x32xi1>, vector<8x32xf32>
    %10 = tpu.iota {dimensions = array<i32: 0>} : vector<8x8xi32>
    %11 = tpu.iota {dimensions = array<i32: 1>} : vector<8x8xi32>
    %12 = arith.cmpi sle, %11, %10 : vector<8x8xi32>
    %c3_i32 = arith.constant 3 : i32
    %13 = vector.broadcast %c3_i32 : i32 to vector<8x8xi32>
    %14 = arith.subi %10, %13 : vector<8x8xi32>
    %15 = arith.cmpi sge, %11, %14 : vector<8x8xi32>
    %16 = arith.andi %12, %15 : vector<8x8xi1>
    %c0_6 = arith.constant 0 : index
    %c0_7 = arith.constant 0 : index
    %c128 = arith.constant 128 : index
    %17 = vector.load %arg1[%c0_6, %c0_7, %c128] : memref<1x8x256xf32, #tpu.memory_space<vmem>>, vector<1x8x32xf32>
    %18 = vector.shape_cast %17 : vector<1x8x32xf32> to vector<8x32xf32>
    %c16_i32_8 = arith.constant 16 : i32
    %19 = tpu.dynamic_rotate %18 by %c16_i32_8 dim 1 : vector<8x32xf32>, i32 -> vector<8x32xf32>
    %20 = arith.mulf %19, %9 : vector<8x32xf32>
    %21 = arith.mulf %18, %1 : vector<8x32xf32>
    %22 = arith.mulf %20, %3 : vector<8x32xf32>
    %23 = arith.addf %21, %22 : vector<8x32xf32>
    %c0_9 = arith.constant 0 : index
    %c0_10 = arith.constant 0 : index
    %c192 = arith.constant 192 : index
    %24 = vector.load %arg1[%c0_9, %c0_10, %c192] : memref<1x8x256xf32, #tpu.memory_space<vmem>>, vector<1x8x32xf32>
    %25 = vector.shape_cast %24 : vector<1x8x32xf32> to vector<8x32xf32>
    %c0_11 = arith.constant 0 : index
    %c0_12 = arith.constant 0 : index
    %c160 = arith.constant 160 : index
    %26 = vector.load %arg1[%c0_11, %c0_12, %c160] : memref<1x8x256xf32, #tpu.memory_space<vmem>>, vector<1x8x32xf32>
    %27 = vector.shape_cast %26 : vector<1x8x32xf32> to vector<8x32xf32>
    %c16_i32_13 = arith.constant 16 : i32
    %28 = tpu.dynamic_rotate %27 by %c16_i32_13 dim 1 : vector<8x32xf32>, i32 -> vector<8x32xf32>
    %29 = arith.mulf %28, %9 : vector<8x32xf32>
    %30 = arith.mulf %27, %1 : vector<8x32xf32>
    %31 = arith.mulf %29, %3 : vector<8x32xf32>
    %32 = arith.addf %30, %31 : vector<8x32xf32>
    %c0_14 = arith.constant 0 : index
    %c0_15 = arith.constant 0 : index
    %c224 = arith.constant 224 : index
    %33 = vector.load %arg1[%c0_14, %c0_15, %c224] : memref<1x8x256xf32, #tpu.memory_space<vmem>>, vector<1x8x32xf32>
    %34 = vector.shape_cast %33 : vector<1x8x32xf32> to vector<8x32xf32>
    %c0_16 = arith.constant 0 : index
    %c0_17 = arith.constant 0 : index
    %c0_18 = arith.constant 0 : index
    %35 = vector.load %arg1[%c0_16, %c0_17, %c0_18] : memref<1x8x256xf32, #tpu.memory_space<vmem>>, vector<1x8x32xf32>
    %36 = vector.shape_cast %35 : vector<1x8x32xf32> to vector<8x32xf32>
    %c16_i32_19 = arith.constant 16 : i32
    %37 = tpu.dynamic_rotate %36 by %c16_i32_19 dim 1 : vector<8x32xf32>, i32 -> vector<8x32xf32>
    %38 = arith.mulf %37, %9 : vector<8x32xf32>
    %39 = arith.mulf %36, %1 : vector<8x32xf32>
    %40 = arith.mulf %38, %3 : vector<8x32xf32>
    %41 = arith.addf %39, %40 : vector<8x32xf32>
    "tpu.trace_start"() <{level = 10 : i32, message = "qd,kd->qk"}> : () -> ()
    %cst_20 = arith.constant dense<0.000000e+00> : vector<8x8xf32>
    %42 = tpu.matmul %41, %23, %cst_20 {dimension_numbers = #tpu.dot_dimension_numbers<[1], [1], [0], [0], [0, 0, 1, 0], [], []>} : vector<8x32xf32>, vector<8x32xf32>, vector<8x8xf32> -> vector<8x8xf32>
    "tpu.trace_stop"() : () -> ()
    %cst_21 = arith.constant 0.176776692 : f32
    %43 = vector.broadcast %cst_21 : f32 to vector<8x8xf32>
    %44 = arith.mulf %42, %43 : vector<8x8xf32>
    %cst_22 = arith.constant 0xFF800000 : f32
    %45 = vector.broadcast %cst_22 : f32 to vector<8x8xf32>
    %46 = arith.select %16, %44, %45 : vector<8x8xi1>, vector<8x8xf32>
    %cst_23 = arith.constant dense<0xFF800000> : vector<8xf32>
    %47 = vector.multi_reduction <maximumf>, %46, %cst_23 [1] : vector<8x8xf32> to vector<8xf32>
    %48 = vector.shape_cast %47 : vector<8xf32> to vector<8x1xf32>
    %49 = vector.broadcast %48 : vector<8x1xf32> to vector<8x8xf32>
    %50 = arith.subf %46, %49 : vector<8x8xf32>
    %51 = math.exp %50 : vector<8x8xf32>
    %cst_24 = arith.constant dense<0.000000e+00> : vector<8xf32>
    %52 = vector.multi_reduction <add>, %51, %cst_24 [1] : vector<8x8xf32> to vector<8xf32>
    %53 = vector.shape_cast %52 : vector<8xf32> to vector<8x1xf32>
    %54 = tpu.reciprocal %53 {approx = true} : vector<8x1xf32> -> vector<8x1xf32>
    %55 = vector.broadcast %54 : vector<8x1xf32> to vector<8x8xf32>
    %56 = arith.mulf %51, %55 : vector<8x8xf32>
    %cst_25 = arith.constant dense<0.000000e+00> : vector<8x32xf32>
    %57 = tpu.matmul %56, %25, %cst_25 {dimension_numbers = #tpu.dot_dimension_numbers<[1], [0], [0], [1], [0, 0, 1, 1], [], []>} : vector<8x8xf32>, vector<8x32xf32>, vector<8x32xf32> -> vector<8x32xf32>
    %c0_26 = arith.constant 0 : index
    %c0_27 = arith.constant 0 : index
    %c32 = arith.constant 32 : index
    %58 = vector.load %arg1[%c0_26, %c0_27, %c32] : memref<1x8x256xf32, #tpu.memory_space<vmem>>, vector<1x8x32xf32>
    %59 = vector.shape_cast %58 : vector<1x8x32xf32> to vector<8x32xf32>
    %c16_i32_28 = arith.constant 16 : i32
    %60 = tpu.dynamic_rotate %59 by %c16_i32_28 dim 1 : vector<8x32xf32>, i32 -> vector<8x32xf32>
    %61 = arith.mulf %60, %9 : vector<8x32xf32>
    %62 = arith.mulf %59, %1 : vector<8x32xf32>
    %63 = arith.mulf %61, %3 : vector<8x32xf32>
    %64 = arith.addf %62, %63 : vector<8x32xf32>
    "tpu.trace_start"() <{level = 10 : i32, message = "qd,kd->qk"}> : () -> ()
    %cst_29 = arith.constant dense<0.000000e+00> : vector<8x8xf32>
    %65 = tpu.matmul %64, %23, %cst_29 {dimension_numbers = #tpu.dot_dimension_numbers<[1], [1], [0], [0], [0, 0, 1, 0], [], []>} : vector<8x32xf32>, vector<8x32xf32>, vector<8x8xf32> -> vector<8x8xf32>
    "tpu.trace_stop"() : () -> ()
    %cst_30 = arith.constant 0.176776692 : f32
    %66 = vector.broadcast %cst_30 : f32 to vector<8x8xf32>
    %67 = arith.mulf %65, %66 : vector<8x8xf32>
    %cst_31 = arith.constant 0xFF800000 : f32
    %68 = vector.broadcast %cst_31 : f32 to vector<8x8xf32>
    %69 = arith.select %16, %67, %68 : vector<8x8xi1>, vector<8x8xf32>
    %cst_32 = arith.constant dense<0xFF800000> : vector<8xf32>
    %70 = vector.multi_reduction <maximumf>, %69, %cst_32 [1] : vector<8x8xf32> to vector<8xf32>
    %71 = vector.shape_cast %70 : vector<8xf32> to vector<8x1xf32>
    %72 = vector.broadcast %71 : vector<8x1xf32> to vector<8x8xf32>
    %73 = arith.subf %69, %72 : vector<8x8xf32>
    %74 = math.exp %73 : vector<8x8xf32>
    %cst_33 = arith.constant dense<0.000000e+00> : vector<8xf32>
    %75 = vector.multi_reduction <add>, %74, %cst_33 [1] : vector<8x8xf32> to vector<8xf32>
    %76 = vector.shape_cast %75 : vector<8xf32> to vector<8x1xf32>
    %77 = tpu.reciprocal %76 {approx = true} : vector<8x1xf32> -> vector<8x1xf32>
    %78 = vector.broadcast %77 : vector<8x1xf32> to vector<8x8xf32>
    %79 = arith.mulf %74, %78 : vector<8x8xf32>
    %cst_34 = arith.constant dense<0.000000e+00> : vector<8x32xf32>
    %80 = tpu.matmul %79, %25, %cst_34 {dimension_numbers = #tpu.dot_dimension_numbers<[1], [0], [0], [1], [0, 0, 1, 1], [], []>} : vector<8x8xf32>, vector<8x32xf32>, vector<8x32xf32> -> vector<8x32xf32>
    %c0_35 = arith.constant 0 : index
    %c0_36 = arith.constant 0 : index
    %c64 = arith.constant 64 : index
    %81 = vector.load %arg1[%c0_35, %c0_36, %c64] : memref<1x8x256xf32, #tpu.memory_space<vmem>>, vector<1x8x32xf32>
    %82 = vector.shape_cast %81 : vector<1x8x32xf32> to vector<8x32xf32>
    %c16_i32_37 = arith.constant 16 : i32
    %83 = tpu.dynamic_rotate %82 by %c16_i32_37 dim 1 : vector<8x32xf32>, i32 -> vector<8x32xf32>
    %84 = arith.mulf %83, %9 : vector<8x32xf32>
    %85 = arith.mulf %82, %1 : vector<8x32xf32>
    %86 = arith.mulf %84, %3 : vector<8x32xf32>
    %87 = arith.addf %85, %86 : vector<8x32xf32>
    "tpu.trace_start"() <{level = 10 : i32, message = "qd,kd->qk"}> : () -> ()
    %cst_38 = arith.constant dense<0.000000e+00> : vector<8x8xf32>
    %88 = tpu.matmul %87, %32, %cst_38 {dimension_numbers = #tpu.dot_dimension_numbers<[1], [1], [0], [0], [0, 0, 1, 0], [], []>} : vector<8x32xf32>, vector<8x32xf32>, vector<8x8xf32> -> vector<8x8xf32>
    "tpu.trace_stop"() : () -> ()
    %cst_39 = arith.constant 0.176776692 : f32
    %89 = vector.broadcast %cst_39 : f32 to vector<8x8xf32>
    %90 = arith.mulf %88, %89 : vector<8x8xf32>
    %cst_40 = arith.constant 0xFF800000 : f32
    %91 = vector.broadcast %cst_40 : f32 to vector<8x8xf32>
    %92 = arith.select %16, %90, %91 : vector<8x8xi1>, vector<8x8xf32>
    %cst_41 = arith.constant dense<0xFF800000> : vector<8xf32>
    %93 = vector.multi_reduction <maximumf>, %92, %cst_41 [1] : vector<8x8xf32> to vector<8xf32>
    %94 = vector.shape_cast %93 : vector<8xf32> to vector<8x1xf32>
    %95 = vector.broadcast %94 : vector<8x1xf32> to vector<8x8xf32>
    %96 = arith.subf %92, %95 : vector<8x8xf32>
    %97 = math.exp %96 : vector<8x8xf32>
    %cst_42 = arith.constant dense<0.000000e+00> : vector<8xf32>
    %98 = vector.multi_reduction <add>, %97, %cst_42 [1] : vector<8x8xf32> to vector<8xf32>
    %99 = vector.shape_cast %98 : vector<8xf32> to vector<8x1xf32>
    %100 = tpu.reciprocal %99 {approx = true} : vector<8x1xf32> -> vector<8x1xf32>
    %101 = vector.broadcast %100 : vector<8x1xf32> to vector<8x8xf32>
    %102 = arith.mulf %97, %101 : vector<8x8xf32>
    %cst_43 = arith.constant dense<0.000000e+00> : vector<8x32xf32>
    %103 = tpu.matmul %102, %34, %cst_43 {dimension_numbers = #tpu.dot_dimension_numbers<[1], [0], [0], [1], [0, 0, 1, 1], [], []>} : vector<8x8xf32>, vector<8x32xf32>, vector<8x32xf32> -> vector<8x32xf32>
    %c0_44 = arith.constant 0 : index
    %c0_45 = arith.constant 0 : index
    %c96 = arith.constant 96 : index
    %104 = vector.load %arg1[%c0_44, %c0_45, %c96] : memref<1x8x256xf32, #tpu.memory_space<vmem>>, vector<1x8x32xf32>
    %105 = vector.shape_cast %104 : vector<1x8x32xf32> to vector<8x32xf32>
    %c16_i32_46 = arith.constant 16 : i32
    %106 = tpu.dynamic_rotate %105 by %c16_i32_46 dim 1 : vector<8x32xf32>, i32 -> vector<8x32xf32>
    %107 = arith.mulf %106, %9 : vector<8x32xf32>
    %108 = arith.mulf %105, %1 : vector<8x32xf32>
    %109 = arith.mulf %107, %3 : vector<8x32xf32>
    %110 = arith.addf %108, %109 : vector<8x32xf32>
    "tpu.trace_start"() <{level = 10 : i32, message = "qd,kd->qk"}> : () -> ()
    %cst_47 = arith.constant dense<0.000000e+00> : vector<8x8xf32>
    %111 = tpu.matmul %110, %32, %cst_47 {dimension_numbers = #tpu.dot_dimension_numbers<[1], [1], [0], [0], [0, 0, 1, 0], [], []>} : vector<8x32xf32>, vector<8x32xf32>, vector<8x8xf32> -> vector<8x8xf32>
    "tpu.trace_stop"() : () -> ()
    %cst_48 = arith.constant 0.176776692 : f32
    %112 = vector.broadcast %cst_48 : f32 to vector<8x8xf32>
    %113 = arith.mulf %111, %112 : vector<8x8xf32>
    %cst_49 = arith.constant 0xFF800000 : f32
    %114 = vector.broadcast %cst_49 : f32 to vector<8x8xf32>
    %115 = arith.select %16, %113, %114 : vector<8x8xi1>, vector<8x8xf32>
    %cst_50 = arith.constant dense<0xFF800000> : vector<8xf32>
    %116 = vector.multi_reduction <maximumf>, %115, %cst_50 [1] : vector<8x8xf32> to vector<8xf32>
    %117 = vector.shape_cast %116 : vector<8xf32> to vector<8x1xf32>
    %118 = vector.broadcast %117 : vector<8x1xf32> to vector<8x8xf32>
    %119 = arith.subf %115, %118 : vector<8x8xf32>
    %120 = math.exp %119 : vector<8x8xf32>
    %cst_51 = arith.constant dense<0.000000e+00> : vector<8xf32>
    %121 = vector.multi_reduction <add>, %120, %cst_51 [1] : vector<8x8xf32> to vector<8xf32>
    %122 = vector.shape_cast %121 : vector<8xf32> to vector<8x1xf32>
    %123 = tpu.reciprocal %122 {approx = true} : vector<8x1xf32> -> vector<8x1xf32>
    %124 = vector.broadcast %123 : vector<8x1xf32> to vector<8x8xf32>
    %125 = arith.mulf %120, %124 : vector<8x8xf32>
    %cst_52 = arith.constant dense<0.000000e+00> : vector<8x32xf32>
    %126 = tpu.matmul %125, %34, %cst_52 {dimension_numbers = #tpu.dot_dimension_numbers<[1], [0], [0], [1], [0, 0, 1, 1], [], []>} : vector<8x8xf32>, vector<8x32xf32>, vector<8x32xf32> -> vector<8x32xf32>
    %127 = tpu.concatenate %57, %80, %103, %126 in 1 : vector<8x32xf32>, vector<8x32xf32>, vector<8x32xf32>, vector<8x32xf32> -> vector<8x128xf32>
    %c0_53 = arith.constant 0 : index
    %c0_54 = arith.constant 0 : index
    %c0_55 = arith.constant 0 : index
    %128 = vector.load %arg4[%c0_53, %c0_54, %c0_55] : memref<1x8x128xf32, #tpu.memory_space<vmem>>, vector<1x8x128xf32>
    %129 = vector.shape_cast %128 : vector<1x8x128xf32> to vector<8x128xf32>
    %130 = vector.shape_cast %127 : vector<8x128xf32> to vector<1x8x128xf32>
    tpu.vector_store %arg4[%c0_53, %c0_54, %c0_55], %130 {strides = array<i32>} : memref<1x8x128xf32, #tpu.memory_space<vmem>>, vector<1x8x128xf32>,
    return
  }
  func.func @transform_0(%arg0: i32) -> (i32, i32, i32) {
    %c0_i32 = arith.constant 0 : i32
    %c0_i32_0 = arith.constant 0 : i32
    %c0_i32_1 = arith.constant 0 : i32
    return %arg0, %c0_i32, %c0_i32_0 : i32, i32, i32
  }
  func.func @transform_1(%arg0: i32) -> (i32, i32, i32) {
    %c0_i32 = arith.constant 0 : i32
    %c0_i32_0 = arith.constant 0 : i32
    %c0_i32_1 = arith.constant 0 : i32
    %c0_i32_2 = arith.constant 0 : i32
    return %c0_i32, %c0_i32_0, %c0_i32_1 : i32, i32, i32
  }
  func.func @transform_2(%arg0: i32) -> (i32, i32, i32) {
    %c0_i32 = arith.constant 0 : i32
    %c0_i32_0 = arith.constant 0 : i32
    %c0_i32_1 = arith.constant 0 : i32
    %c0_i32_2 = arith.constant 0 : i32
    return %c0_i32, %c0_i32_0, %c0_i32_1 : i32, i32, i32
  }
  func.func @transform_3(%arg0: i32) -> (i32, i32, i32) {
    %c0_i32 = arith.constant 0 : i32
    %c0_i32_0 = arith.constant 0 : i32
    %c0_i32_1 = arith.constant 0 : i32
    return %arg0, %c0_i32, %c0_i32_0 : i32, i32, i32
  }
}

module attributes {stable_mosaic.version = 11 : i64} {
  func.func @_rmsnorm_gateup_kernel(%arg0: i32, %arg1: i32, %arg2: memref<16x128xf32, #tpu.memory_space<vmem>>, %arg3: memref<1x128xf32, #tpu.memory_space<vmem>>, %arg4: memref<128x256xf32, #tpu.memory_space<vmem>>, %arg5: memref<128x256xf32, #tpu.memory_space<vmem>>, %arg6: memref<16x256xf32, #tpu.memory_space<vmem>>) attributes {dimension_semantics = [#tpu.dimension_semantics<parallel>, #tpu.dimension_semantics<parallel>], iteration_bounds = array<i64: 1, 1>, scalar_prefetch = 0 : i64, scratch_operands = 0 : i64, tpu.core_type = #tpu.core_type<tc>, window_params = [{transform_indices = @transform_0, window_bounds = array<i64: 16, 128>}, {pipeline_mode = #tpu.pipeline_mode<synchronous>, transform_indices = @transform_1, window_bounds = array<i64: 1, 128>}, {transform_indices = @transform_2, window_bounds = array<i64: 128, 256>}, {transform_indices = @transform_3, window_bounds = array<i64: 128, 256>}, {transform_indices = @transform_4, window_bounds = array<i64: 16, 256>}]} {
    %c0 = arith.constant 0 : index
    %c0_0 = arith.constant 0 : index
    %0 = vector.load %arg2[%c0, %c0_0] : memref<16x128xf32, #tpu.memory_space<vmem>>, vector<16x128xf32>
    %1 = arith.mulf %0, %0 : vector<16x128xf32>
    %cst = arith.constant dense<0.000000e+00> : vector<16xf32>
    %2 = vector.multi_reduction <add>, %1, %cst [1] : vector<16x128xf32> to vector<16xf32>
    %3 = vector.shape_cast %2 : vector<16xf32> to vector<16x1xf32>
    %cst_1 = arith.constant 1.280000e+02 : f32
    %4 = vector.broadcast %cst_1 : f32 to vector<16x1xf32>
    %5 = arith.divf %3, %4 : vector<16x1xf32>
    %cst_2 = arith.constant 9.99999974E-6 : f32
    %6 = vector.broadcast %cst_2 : f32 to vector<16x1xf32>
    %7 = arith.addf %5, %6 : vector<16x1xf32>
    %8 = math.rsqrt %7 : vector<16x1xf32>
    %9 = vector.broadcast %8 : vector<16x1xf32> to vector<16x128xf32>
    %10 = arith.mulf %0, %9 : vector<16x128xf32>
    %c0_3 = arith.constant 0 : index
    %c0_4 = arith.constant 0 : index
    %11 = vector.load %arg3[%c0_3, %c0_4] : memref<1x128xf32, #tpu.memory_space<vmem>>, vector<1x128xf32>
    %12 = vector.broadcast %11 : vector<1x128xf32> to vector<16x128xf32>
    %13 = arith.mulf %10, %12 : vector<16x128xf32>
    %c0_5 = arith.constant 0 : index
    %c0_6 = arith.constant 0 : index
    %14 = vector.load %arg4[%c0_5, %c0_6] : memref<128x256xf32, #tpu.memory_space<vmem>>, vector<128x256xf32>
    %cst_7 = arith.constant dense<0.000000e+00> : vector<16x256xf32>
    %15 = tpu.matmul %13, %14, %cst_7 {dimension_numbers = #tpu.dot_dimension_numbers<[1], [0], [0], [1], [0, 0, 1, 1], [], []>} : vector<16x128xf32>, vector<128x256xf32>, vector<16x256xf32> -> vector<16x256xf32>
    %c0_8 = arith.constant 0 : index
    %c0_9 = arith.constant 0 : index
    %16 = vector.load %arg5[%c0_8, %c0_9] : memref<128x256xf32, #tpu.memory_space<vmem>>, vector<128x256xf32>
    %cst_10 = arith.constant dense<0.000000e+00> : vector<16x256xf32>
    %17 = tpu.matmul %13, %16, %cst_10 {dimension_numbers = #tpu.dot_dimension_numbers<[1], [0], [0], [1], [0, 0, 1, 1], [], []>} : vector<16x128xf32>, vector<128x256xf32>, vector<16x256xf32> -> vector<16x256xf32>
    %18 = arith.negf %15 : vector<16x256xf32>
    %19 = math.exp %18 : vector<16x256xf32>
    %cst_11 = arith.constant 1.000000e+00 : f32
    %20 = vector.broadcast %cst_11 : f32 to vector<16x256xf32>
    %21 = arith.addf %20, %19 : vector<16x256xf32>
    %22 = arith.divf %20, %21 : vector<16x256xf32>
    %23 = arith.mulf %15, %22 : vector<16x256xf32>
    %24 = arith.mulf %23, %17 : vector<16x256xf32>
    %c0_12 = arith.constant 0 : index
    %c0_13 = arith.constant 0 : index
    %25 = vector.load %arg6[%c0_12, %c0_13] : memref<16x256xf32, #tpu.memory_space<vmem>>, vector<16x256xf32>
    tpu.vector_store %arg6[%c0_12, %c0_13], %24 {strides = array<i32>} : memref<16x256xf32, #tpu.memory_space<vmem>>, vector<16x256xf32>,
    return
  }
  func.func @transform_0(%arg0: i32, %arg1: i32) -> (i32, i32) {
    %c0_i32 = arith.constant 0 : i32
    %c0_i32_0 = arith.constant 0 : i32
    return %arg0, %c0_i32 : i32, i32
  }
  func.func @transform_1(%arg0: i32, %arg1: i32) -> (i32, i32) {
    %c0_i32 = arith.constant 0 : i32
    %c0_i32_0 = arith.constant 0 : i32
    %c0_i32_1 = arith.constant 0 : i32
    return %c0_i32, %c0_i32_0 : i32, i32
  }
  func.func @transform_2(%arg0: i32, %arg1: i32) -> (i32, i32) {
    %c0_i32 = arith.constant 0 : i32
    %c0_i32_0 = arith.constant 0 : i32
    return %c0_i32, %arg1 : i32, i32
  }
  func.func @transform_3(%arg0: i32, %arg1: i32) -> (i32, i32) {
    %c0_i32 = arith.constant 0 : i32
    %c0_i32_0 = arith.constant 0 : i32
    return %c0_i32, %arg1 : i32, i32
  }
  func.func @transform_4(%arg0: i32, %arg1: i32) -> (i32, i32) {
    %c0_i32 = arith.constant 0 : i32
    return %arg0, %arg1 : i32, i32
  }
}

module attributes {stable_mosaic.version = 11 : i64} {
  func.func @_matmul_residual_kernel(%arg0: i32, %arg1: i32, %arg2: i32, %arg3: memref<16x256xf32, #tpu.memory_space<vmem>>, %arg4: memref<256x128xf32, #tpu.memory_space<vmem>>, %arg5: memref<16x128xf32, #tpu.memory_space<vmem>>, %arg6: memref<16x128xf32, #tpu.memory_space<vmem>>, %arg7: memref<16x128xf32, #tpu.memory_space<vmem>>) attributes {dimension_semantics = [#tpu.dimension_semantics<parallel>, #tpu.dimension_semantics<parallel>, #tpu.dimension_semantics<arbitrary>], iteration_bounds = array<i64: 1, 1, 1>, scalar_prefetch = 0 : i64, scratch_operands = 1 : i64, tpu.core_type = #tpu.core_type<tc>, window_params = [{transform_indices = @transform_0, window_bounds = array<i64: 16, 256>}, {transform_indices = @transform_1, window_bounds = array<i64: 256, 128>}, {transform_indices = @transform_2, window_bounds = array<i64: 16, 128>}, {transform_indices = @transform_3, window_bounds = array<i64: 16, 128>}]} {
    %c0_i32 = arith.constant 0 : i32
    %0 = arith.cmpi eq, %arg2, %c0_i32 : i32
    %1 = arith.extui %0 : i1 to i32
    %c0_i32_0 = arith.constant 0 : i32
    %2 = arith.cmpi ne, %1, %c0_i32_0 : i32
    scf.if %2 {
      %cst_10 = arith.constant 0.000000e+00 : f32
      %12 = vector.broadcast %cst_10 : f32 to vector<16x128xf32>
      %c0_11 = arith.constant 0 : index
      %c0_12 = arith.constant 0 : index
      %13 = vector.load %arg7[%c0_11, %c0_12] : memref<16x128xf32, #tpu.memory_space<vmem>>, vector<16x128xf32>
      tpu.vector_store %arg7[%c0_11, %c0_12], %12 {strides = array<i32>} : memref<16x128xf32, #tpu.memory_space<vmem>>, vector<16x128xf32>,
    } else {
    }
    %c0 = arith.constant 0 : index
    %c0_1 = arith.constant 0 : index
    %3 = vector.load %arg7[%c0, %c0_1] : memref<16x128xf32, #tpu.memory_space<vmem>>, vector<16x128xf32>
    %c0_2 = arith.constant 0 : index
    %c0_3 = arith.constant 0 : index
    %4 = vector.load %arg3[%c0_2, %c0_3] : memref<16x256xf32, #tpu.memory_space<vmem>>, vector<16x256xf32>
    %c0_4 = arith.constant 0 : index
    %c0_5 = arith.constant 0 : index
    %5 = vector.load %arg4[%c0_4, %c0_5] : memref<256x128xf32, #tpu.memory_space<vmem>>, vector<256x128xf32>
    %cst = arith.constant dense<0.000000e+00> : vector<16x128xf32>
    %6 = tpu.matmul %4, %5, %cst {dimension_numbers = #tpu.dot_dimension_numbers<[1], [0], [0], [1], [0, 0, 1, 1], [], []>} : vector<16x256xf32>, vector<256x128xf32>, vector<16x128xf32> -> vector<16x128xf32>
    %7 = arith.addf %3, %6 : vector<16x128xf32>
    %c0_6 = arith.constant 0 : index
    %c0_7 = arith.constant 0 : index
    %8 = vector.load %arg7[%c0_6, %c0_7] : memref<16x128xf32, #tpu.memory_space<vmem>>, vector<16x128xf32>
    tpu.vector_store %arg7[%c0_6, %c0_7], %7 {strides = array<i32>} : memref<16x128xf32, #tpu.memory_space<vmem>>, vector<16x128xf32>,
    %c0_i32_8 = arith.constant 0 : i32
    %9 = arith.cmpi eq, %arg2, %c0_i32_8 : i32
    %10 = arith.extui %9 : i1 to i32
    %c0_i32_9 = arith.constant 0 : i32
    %11 = arith.cmpi ne, %10, %c0_i32_9 : i32
    scf.if %11 {
      %c0_10 = arith.constant 0 : index
      %c0_11 = arith.constant 0 : index
      %12 = vector.load %arg7[%c0_10, %c0_11] : memref<16x128xf32, #tpu.memory_space<vmem>>, vector<16x128xf32>
      %c0_12 = arith.constant 0 : index
      %c0_13 = arith.constant 0 : index
      %13 = vector.load %arg5[%c0_12, %c0_13] : memref<16x128xf32, #tpu.memory_space<vmem>>, vector<16x128xf32>
      %14 = arith.addf %12, %13 : vector<16x128xf32>
      %c0_14 = arith.constant 0 : index
      %c0_15 = arith.constant 0 : index
      %15 = vector.load %arg6[%c0_14, %c0_15] : memref<16x128xf32, #tpu.memory_space<vmem>>, vector<16x128xf32>
      tpu.vector_store %arg6[%c0_14, %c0_15], %14 {strides = array<i32>} : memref<16x128xf32, #tpu.memory_space<vmem>>, vector<16x128xf32>,
    } else {
    }
    return
  }
  func.func @transform_0(%arg0: i32, %arg1: i32, %arg2: i32) -> (i32, i32) {
    %c0_i32 = arith.constant 0 : i32
    return %arg0, %arg2 : i32, i32
  }
  func.func @transform_1(%arg0: i32, %arg1: i32, %arg2: i32) -> (i32, i32) {
    %c0_i32 = arith.constant 0 : i32
    return %arg2, %arg1 : i32, i32
  }
  func.func @transform_2(%arg0: i32, %arg1: i32, %arg2: i32) -> (i32, i32) {
    %c0_i32 = arith.constant 0 : i32
    return %arg0, %arg1 : i32, i32
  }
  func.func @transform_3(%arg0: i32, %arg1: i32, %arg2: i32) -> (i32, i32) {
    %c0_i32 = arith.constant 0 : i32
    return %arg0, %arg1 : i32, i32
  }
}

</mosaic_0001>

<bundles_post_ra>
// kernel: _lambda_.7
= control target key start
LH: loop header
LB: loop body
LE: loop exit
PB: predicated region body
PF: predicated region fallthrough
CT: control target
= control target key end

     0   :  { %s184_s1 = inlined_call_operand.vmem [shape: f32[128,128], index: 1, kind: input, shape index: {}]   ;;  %s185_s0 = inlined_call_operand.vmem [shape: f32[16,128], index: 0, kind: input, shape index: {}]   ;;  %s186_s2 = inlined_call_operand.vmem [shape: f32[16,128], index: 2, kind: input, shape index: {}]   ;;  %s187_s3 = inlined_call_operand.vmem [shape: f32[16,128], index: 3, kind: output, shape index: {}]  }
   0x1   :  { %v39_v0 = vld [vmem:[%s184_s1 + $0x78] sm:$0xff]  ;;  %v38_v1 = vld [vmem:[%s184_s1 + $0x70] sm:$0xff]  ;;  %v37_v2 = vld [vmem:[%s184_s1 + $0x68] sm:$0xff] }
   0x2   :  { %40 = vmatpush.msra.mxu0 %v39_v0  ;;  %82 = vmatpush.msra.mxu1 %v39_v0  ;;  %v36_v3 = vld [vmem:[%s184_s1 + $0x60] sm:$0xff]  ;;  %v35_v4 = vld [vmem:[%s184_s1 + $0x58] sm:$0xff]  ;;  %v34_v5 = vld [vmem:[%s184_s1 + $0x50] sm:$0xff] }
   0x3   :  { %v33_v6 = vld [vmem:[%s184_s1 + $0x48] sm:$0xff]  ;;  %v32_v7 = vld [vmem:[%s184_s1 + $0x40] sm:$0xff]  ;;  %v31_v8 = vld [vmem:[%s184_s1 + $0x38] sm:$0xff] }
   0x4   :  { %41 = vmatpush.msra.mxu0 %v38_v1  ;;  %83 = vmatpush.msra.mxu1 %v38_v1  ;;  %v30_v9 = vld [vmem:[%s184_s1 + $0x30] sm:$0xff]  ;;  %v29_v10 = vld [vmem:[%s184_s1 + $0x28] sm:$0xff]  ;;  %v28_v11 = vld [vmem:[%s184_s1 + $0x20] sm:$0xff] }
   0x5   :  { %v27_v12 = vld [vmem:[%s184_s1 + $0x18] sm:$0xff]  ;;  %v26_v13 = vld [vmem:[%s184_s1 + $0x10] sm:$0xff]  ;;  %v25_v14 = vld [vmem:[%s184_s1 + $0x8] sm:$0xff] }
   0x6   :  { %42 = vmatpush.msra.mxu0 %v37_v2  ;;  %84 = vmatpush.msra.mxu1 %v37_v2  ;;  %v24_v15 = vld [vmem:[%s184_s1] sm:$0xff]  ;;  %v23_v17 = vld [vmem:[%s185_s0 + $0x8] sm:$0xff] }
   0x7   :  { %v22_v16 = vld [vmem:[%s185_s0] sm:$0xff]  ;;  %v73_v19 = vld [vmem:[%s186_s2 + $0x8] sm:$0xff] }
   0x8   :  { %43 = vmatpush.msra.mxu0 %v36_v3  ;;  %85 = vmatpush.msra.mxu1 %v36_v3  ;;  %v72_v18 = vld [vmem:[%s186_s2] sm:$0xff] }
   0xa   :  { %44 = vmatpush.msra.mxu0 %v35_v4  ;;  %86 = vmatpush.msra.mxu1 %v35_v4 }
   0xc   :  { %45 = vmatpush.msra.mxu0 %v34_v5  ;;  %87 = vmatpush.msra.mxu1 %v34_v5 }
   0xe   :  { %46 = vmatpush.msra.mxu0 %v33_v6  ;;  %88 = vmatpush.msra.mxu1 %v33_v6 }
  0x10   :  { %47 = vmatpush.msra.mxu0 %v32_v7  ;;  %89 = vmatpush.msra.mxu1 %v32_v7 }
  0x12   :  { %48 = vmatpush.msra.mxu0 %v31_v8  ;;  %90 = vmatpush.msra.mxu1 %v31_v8 }
  0x14   :  { %49 = vmatpush.msra.mxu0 %v30_v9  ;;  %91 = vmatpush.msra.mxu1 %v30_v9 }
  0x16   :  { %50 = vmatpush.msra.mxu0 %v29_v10  ;;  %92 = vmatpush.msra.mxu1 %v29_v10 }
  0x18   :  { %51 = vmatpush.msra.mxu0 %v28_v11  ;;  %93 = vmatpush.msra.mxu1 %v28_v11 }
  0x1a   :  { %52 = vmatpush.msra.mxu0 %v27_v12  ;;  %94 = vmatpush.msra.mxu1 %v27_v12 }
  0x1c   :  { %53 = vmatpush.msra.mxu0 %v26_v13  ;;  %95 = vmatpush.msra.mxu1 %v26_v13 }
  0x1e   :  { %54 = vmatpush.msra.mxu0 %v25_v14  ;;  %96 = vmatpush.msra.mxu1 %v25_v14 }
  0x20   :  { %55 = vmatpush.msra.mxu0 %v24_v15  ;;  %97 = vmatpush.msra.mxu1 %v24_v15 }
  0x21   :  { %56 = vmatmul.f32.vlgmr.msra.gmra.mxu0 %v22_v16  ;;  %59 = vmatmul.f32.vlgmr.msra.gmra.mxu1 %v23_v17 }
  0x9e   :  { %v57_v20 = vpop.f32.mrf.mxu0  ;;  %v60_v21 = vpop.f32.mrf.mxu1 }
  0x9f   :  { %v74_v22 = vadd.f32 %v72_v18, %v57_v20  ;;  %v75_v23 = vadd.f32 %v73_v19, %v60_v21 }
  0xa1   :  { %76 = vst [vmem:[%s187_s3] sm:$0xff] %v74_v22 }
  0xa2   :  { %77 = vst [vmem:[%s187_s3 + $0x8] sm:$0xff] %v75_v23 }

// kernel: _lambda_.5
= control target key start
LH: loop header
LB: loop body
LE: loop exit
PB: predicated region body
PF: predicated region fallthrough
CT: control target
= control target key end

     0   :  { %v187_v14 = vmov 128.0   ;;  %s335_s0 = inlined_call_operand.vmem [shape: f32[16,128], index: 0, kind: input, shape index: {}]   ;;  %s336_s2 = inlined_call_operand.vmem [shape: f32[128,256], index: 2, kind: input, shape index: {}]   ;;  %s337_s1 = inlined_call_operand.vmem [shape: f32[1,128], index: 1, kind: input, shape index: {}]   ;;  %s338_s3 = inlined_call_operand.vmem [shape: f32[16,256], index: 3, kind: output, shape index: {}]  }
   0x1   :  { %v211_v0 = vld [vmem:[%s335_s0 + $0x8] sm:$0xff]  ;;  %v91_v1 = vld [vmem:[%s336_s2 + $0xf0] sm:$0xff]  ;;  %v92_v3 = vld [vmem:[%s336_s2 + $0xf8] sm:$0xff]  ;;  %181 = vrcp.f32 %v187_v14 }
   0x2   :  { %v17_v2 = vmul.f32 %v211_v0, %v211_v0  ;;  %147 = vmatpush.msra.mxu2 %v91_v1  ;;  %v89_v4 = vld [vmem:[%s336_s2 + $0xe0] sm:$0xff]  ;;  %v90_v5 = vld [vmem:[%s336_s2 + $0xe8] sm:$0xff]  ;;  %93 = vmatpush.msra.mxu0 %v91_v1  ;;  %v87_v6 = vld [vmem:[%s336_s2 + $0xd0] sm:$0xff] }
   0x3   :  { %163 = vmatpush.msra.mxu3 %v92_v3  ;;  %116 = vmatpush.msra.mxu1 %v92_v3  ;;  %v88_v7 = vld [vmem:[%s336_s2 + $0xd8] sm:$0xff]  ;;  %v236_v8 = vld [vmem:[%s335_s0] sm:$0xff]  ;;  %v86_v11 = vld [vmem:[%s336_s2 + $0xc8] sm:$0xff] }
   0x4   :  { %20 = vadd.xlane.f32.xlu0 %v17_v2  ;;  %148 = vmatpush.msra.mxu2 %v89_v4  ;;  %v16_v9 = vmul.f32 %v236_v8, %v236_v8  ;;  %v85_v10 = vld [vmem:[%s336_s2 + $0xc0] sm:$0xff]  ;;  %v83_v12 = vld [vmem:[%s336_s2 + $0xb0] sm:$0xff]  ;;  %v84_v13 = vld [vmem:[%s336_s2 + $0xb8] sm:$0xff] }
   0x5   :  { %164 = vmatpush.msra.mxu3 %v90_v5  ;;  %94 = vmatpush.msra.mxu0 %v89_v4  ;;  %v81_v15 = vld [vmem:[%s336_s2 + $0xa0] sm:$0xff]  ;;  %v82_v16 = vld [vmem:[%s336_s2 + $0xa8] sm:$0xff]  ;;  %v79_v17 = vld [vmem:[%s336_s2 + $0x90] sm:$0xff] }
   0x6   :  { %149 = vmatpush.msra.mxu2 %v87_v6  ;;  %117 = vmatpush.msra.mxu1 %v90_v5  ;;  %v80_v18 = vld [vmem:[%s336_s2 + $0x98] sm:$0xff]  ;;  %v77_v19 = vld [vmem:[%s336_s2 + $0x80] sm:$0xff]  ;;  %v78_v20 = vld [vmem:[%s336_s2 + $0x88] sm:$0xff] }
   0x7   :  { %165 = vmatpush.msra.mxu3 %v88_v7  ;;  %95 = vmatpush.msra.mxu0 %v87_v6  ;;  %v182_v21 = vpop.eup %181  ;;  %v75_v22 = vld [vmem:[%s336_s2 + $0x70] sm:$0xff]  ;;  %v76_v23 = vld [vmem:[%s336_s2 + $0x78] sm:$0xff]  ;;  %v73_v24 = vld [vmem:[%s336_s2 + $0x60] sm:$0xff] }
   0x8   :  { %118 = vmatpush.msra.mxu1 %v88_v7  ;;  %150 = vmatpush.msra.mxu2 %v85_v10  ;;  %v74_v25 = vld [vmem:[%s336_s2 + $0x68] sm:$0xff]  ;;  %v23_v26 = vmul.f32 128.0, %v182_v21  ;;  %v71_v27 = vld [vmem:[%s336_s2 + $0x50] sm:$0xff]  ;;  %v72_v28 = vld [vmem:[%s336_s2 + $0x58] sm:$0xff]  ;;  %vm27_vm0 = vweird.f32 %v182_v21 }
   0x9   :  { %166 = vmatpush.msra.mxu3 %v86_v11  ;;  %96 = vmatpush.msra.mxu0 %v85_v10  ;;  %v69_v29 = vld [vmem:[%s336_s2 + $0x40] sm:$0xff]  ;;  %v70_v30 = vld [vmem:[%s336_s2 + $0x48] sm:$0xff]  ;;  %v67_v32 = vld [vmem:[%s336_s2 + $0x30] sm:$0xff] }
   0xa   :  { %119 = vmatpush.msra.mxu1 %v86_v11  ;;  %151 = vmatpush.msra.mxu2 %v83_v12  ;;  %v24_v31 = vsub.f32 1.0, %v23_v26  ;;  %v68_v33 = vld [vmem:[%s336_s2 + $0x38] sm:$0xff]  ;;  %v65_v34 = vld [vmem:[%s336_s2 + $0x20] sm:$0xff]  ;;  %v66_v35 = vld [vmem:[%s336_s2 + $0x28] sm:$0xff] }
   0xb   :  { %167 = vmatpush.msra.mxu3 %v84_v13  ;;  %97 = vmatpush.msra.mxu0 %v83_v12  ;;  %v63_v37 = vld [vmem:[%s336_s2 + $0x10] sm:$0xff]  ;;  %v64_v38 = vld [vmem:[%s336_s2 + $0x18] sm:$0xff]  ;;  %v61_v39 = vld [vmem:[%s336_s2] sm:$0xff] }
   0xc   :  { %18 = vadd.xlane.f32.xlu0 %v16_v9  ;;  %120 = vmatpush.msra.mxu1 %v84_v13  ;;  %v25_v36 = vmul.f32 %v182_v21, %v24_v31  ;;  %v62_v40 = vld [vmem:[%s336_s2 + $0x8] sm:$0xff]  ;;  %v180_v57 = vld [vmem:[%s337_s1] ss:$0 sm:$0xff] }
   0xd   :  { %152 = vmatpush.msra.mxu2 %v81_v15  ;;  %168 = vmatpush.msra.mxu3 %v82_v16 }
   0xe   :  { %98 = vmatpush.msra.mxu0 %v81_v15  ;;  %121 = vmatpush.msra.mxu1 %v82_v16  ;;  %v26_v41 = vadd.f32 %v182_v21, %v25_v36 }
   0xf   :  { %153 = vmatpush.msra.mxu2 %v79_v17  ;;  %169 = vmatpush.msra.mxu3 %v80_v18 }
  0x10   :  { %99 = vmatpush.msra.mxu0 %v79_v17  ;;  %122 = vmatpush.msra.mxu1 %v80_v18  ;;  %v28_v42 = vsel %vm27_vm0, %v182_v21, %v26_v41 }
  0x11   :  { %154 = vmatpush.msra.mxu2 %v77_v19  ;;  %170 = vmatpush.msra.mxu3 %v78_v20 }
  0x12   :  { %100 = vmatpush.msra.mxu0 %v77_v19  ;;  %123 = vmatpush.msra.mxu1 %v78_v20 }
  0x13   :  { %155 = vmatpush.msra.mxu2 %v75_v22  ;;  %171 = vmatpush.msra.mxu3 %v76_v23 }
  0x14   :  { %101 = vmatpush.msra.mxu0 %v75_v22  ;;  %124 = vmatpush.msra.mxu1 %v76_v23 }
  0x15   :  { %156 = vmatpush.msra.mxu2 %v73_v24  ;;  %172 = vmatpush.msra.mxu3 %v74_v25 }
  0x16   :  { %102 = vmatpush.msra.mxu0 %v73_v24  ;;  %125 = vmatpush.msra.mxu1 %v74_v25 }
  0x17   :  { %157 = vmatpush.msra.mxu2 %v71_v27  ;;  %173 = vmatpush.msra.mxu3 %v72_v28 }
  0x18   :  { %103 = vmatpush.msra.mxu0 %v71_v27  ;;  %126 = vmatpush.msra.mxu1 %v72_v28 }
  0x19   :  { %158 = vmatpush.msra.mxu2 %v69_v29  ;;  %174 = vmatpush.msra.mxu3 %v70_v30 }
  0x1a   :  { %104 = vmatpush.msra.mxu0 %v69_v29  ;;  %127 = vmatpush.msra.mxu1 %v70_v30 }
  0x1b   :  { %159 = vmatpush.msra.mxu2 %v67_v32  ;;  %175 = vmatpush.msra.mxu3 %v68_v33 }
  0x1c   :  { %105 = vmatpush.msra.mxu0 %v67_v32  ;;  %128 = vmatpush.msra.mxu1 %v68_v33 }
  0x1d   :  { %160 = vmatpush.msra.mxu2 %v65_v34  ;;  %176 = vmatpush.msra.mxu3 %v66_v35 }
  0x1e   :  { %106 = vmatpush.msra.mxu0 %v65_v34  ;;  %129 = vmatpush.msra.mxu1 %v66_v35 }
  0x1f   :  { %161 = vmatpush.msra.mxu2 %v63_v37  ;;  %177 = vmatpush.msra.mxu3 %v64_v38 }
  0x20   :  { %107 = vmatpush.msra.mxu0 %v63_v37  ;;  %130 = vmatpush.msra.mxu1 %v64_v38 }
  0x21   :  { %162 = vmatpush.msra.mxu2 %v61_v39  ;;  %178 = vmatpush.msra.mxu3 %v62_v40 }
  0x22   :  { %108 = vmatpush.msra.mxu0 %v61_v39  ;;  %131 = vmatpush.msra.mxu1 %v62_v40 }
  0x77   :  { %v21_v43 = vpop.xlane.xlu0 %20 }
  0x78   :  { %v30_v44 = vmul.f32 %v28_v42, %v21_v43 }
  0x7a   :  { %v32_v45 = vadd.f32 1e-05, %v30_v44 }
  0x7c   :  { %183 = vrsqrt.f32 %v32_v45  ;;  %vm49_vm2 = vweird.f32 %v32_v45 }
  0x7f   :  { %v19_v46 = vpop.xlane.xlu0 %18 }
  0x80   :  { %v29_v47 = vmul.f32 %v28_v42, %v19_v46 }
  0x82   :  { %v184_v48 = vpop.eup %183  ;;  %v31_v49 = vadd.f32 1e-05, %v29_v47 }
  0x83   :  { %v44_v50 = vmul.f32 %v184_v48, %v32_v45  ;;  %vm50_vm1 = vweird.f32 %v184_v48 }
  0x84   :  { %185 = vrsqrt.f32 %v31_v49  ;;  %vm51_vm3 = vmor %vm49_vm2, %vm50_vm1  ;;  %vm39_vm5 = vweird.f32 %v31_v49 }
  0x85   :  { %v45_v51 = vmul.f32 %v184_v48, %v44_v50 }
  0x87   :  { %v46_v52 = vmul.f32 0.5, %v45_v51 }
  0x89   :  { %v47_v53 = vsub.f32 1.5, %v46_v52 }
  0x8a   :  { %v186_v54 = vpop.eup %185 }
  0x8b   :  { %v34_v55 = vmul.f32 %v186_v54, %v31_v49  ;;  %v48_v56 = vmul.f32 %v184_v48, %v47_v53  ;;  %vm40_vm4 = vweird.f32 %v186_v54 }
  0x8c   :  { %vm41_vm6 = vmor %vm39_vm5, %vm40_vm4 }
  0x8d   :  { %v35_v58 = vmul.f32 %v186_v54, %v34_v55  ;;  %v52_v59 = vsel %vm51_vm3, %v184_v48, %v48_v56 }
  0x8e   :  { %v54_v60 = vmul.f32 %v52_v59, %v211_v0 }
  0x8f   :  { %v36_v61 = vmul.f32 0.5, %v35_v58 }
  0x90   :  { %v60_v62 = vmul.f32 %v180_v57, %v54_v60 }
  0x91   :  { %v37_v63 = vsub.f32 1.5, %v36_v61 }
  0x92   :  { %112 = vmatmul.f32.vlgmr.msra.gmra.mxu2 %v60_v62  ;;  %135 = vmatmul.f32.vlgmr.msra.gmra.mxu3 %v60_v62 }
  0x93   :  { %v38_v1 = vmul.f32 %v186_v54, %v37_v63 }
  0x95   :  { %v42_v2 = vsel %vm41_vm6, %v186_v54, %v38_v1 }
  0x96   :  { %v53_v3 = vmul.f32 %v42_v2, %v236_v8 }
  0x98   :  { %v59_v4 = vmul.f32 %v180_v57, %v53_v3 }
  0x9a   :  { %109 = vmatmul.f32.vlgmr.msra.gmra.mxu0 %v59_v4  ;;  %132 = vmatmul.f32.vlgmr.msra.gmra.mxu1 %v59_v4 }
 0x115   :  { %v113_v5 = vpop.f32.mrf.mxu2  ;;  %v136_v6 = vpop.f32.mrf.mxu3 }
 0x116   :  { %141 = vst [vmem:[%s338_s3 + $0x10] sm:$0xff] %v113_v5 }
 0x117   :  { %142 = vst [vmem:[%s338_s3 + $0x18] sm:$0xff] %v136_v6  ;;  %v110_v0 = vpop.f32.mrf.mxu0  ;;  %v133_v7 = vpop.f32.mrf.mxu1 }
 0x118   :  { %139 = vst [vmem:[%s338_s3] sm:$0xff] %v110_v0 }
 0x119   :  { %140 = vst [vmem:[%s338_s3 + $0x8] sm:$0xff] %v133_v7 }

// kernel: _lambda_.8
= control target key start
LH: loop header
LB: loop body
LE: loop exit
PB: predicated region body
PF: predicated region fallthrough
CT: control target
= control target key end

     0   :  { %v340_v24 = vmov 128.0   ;;  %s604_s0 = inlined_call_operand.vmem [shape: f32[16,128], index: 0, kind: input, shape index: {}]   ;;  %s605_s2 = inlined_call_operand.vmem [shape: f32[128,256], index: 2, kind: input, shape index: {}]   ;;  %s606_s3 = inlined_call_operand.vmem [shape: f32[128,256], index: 3, kind: input, shape index: {}]   ;;  %s607_s1 = inlined_call_operand.vmem [shape: f32[1,128], index: 1, kind: input, shape index: {}]   ;;  %s608_s4 = inlined_call_operand.vmem [shape: f32[16,256], index: 4, kind: output, shape index: {}]  }
   0x1   :  { %v369_v0 = vld [vmem:[%s604_s0] sm:$0xff]  ;;  %v94_v1 = vld [vmem:[%s605_s2 + $0xf0] sm:$0xff]  ;;  %v95_v3 = vld [vmem:[%s605_s2 + $0xf8] sm:$0xff]  ;;  %318 = vrcp.f32 %v340_v24 }
   0x2   :  { %v19_v2 = vmul.f32 %v369_v0, %v369_v0  ;;  %96 = vmatpush.msra.mxu0 %v94_v1  ;;  %v172_v4 = vld [vmem:[%s606_s3 + $0xf0] sm:$0xff]  ;;  %v173_v5 = vld [vmem:[%s606_s3 + $0xf8] sm:$0xff]  ;;  %119 = vmatpush.msra.mxu1 %v95_v3  ;;  %v92_v6 = vld [vmem:[%s605_s2 + $0xe0] sm:$0xff] }
   0x3   :  { %174 = vmatpush.msra.mxu2 %v172_v4  ;;  %v93_v7 = vld [vmem:[%s605_s2 + $0xe8] sm:$0xff]  ;;  %v170_v8 = vld [vmem:[%s606_s3 + $0xe0] sm:$0xff]  ;;  %197 = vmatpush.msra.mxu3 %v173_v5  ;;  %v90_v10 = vld [vmem:[%s605_s2 + $0xd0] sm:$0xff] }
   0x4   :  { %21 = vadd.xlane.f32.xlu0 %v19_v2  ;;  %v171_v9 = vld [vmem:[%s606_s3 + $0xe8] sm:$0xff]  ;;  %v91_v11 = vld [vmem:[%s605_s2 + $0xd8] sm:$0xff]  ;;  %97 = vmatpush.msra.mxu0 %v92_v6  ;;  %v168_v13 = vld [vmem:[%s606_s3 + $0xd0] sm:$0xff] }
   0x5   :  { %v406_v12 = vld [vmem:[%s604_s0 + $0x8] sm:$0xff]  ;;  %120 = vmatpush.msra.mxu1 %v93_v7  ;;  %v169_v14 = vld [vmem:[%s606_s3 + $0xd8] sm:$0xff]  ;;  %175 = vmatpush.msra.mxu2 %v170_v8  ;;  %v88_v16 = vld [vmem:[%s605_s2 + $0xc0] sm:$0xff] }
   0x6   :  { %198 = vmatpush.msra.mxu3 %v171_v9  ;;  %98 = vmatpush.msra.mxu0 %v90_v10  ;;  %v20_v15 = vmul.f32 %v406_v12, %v406_v12  ;;  %v89_v17 = vld [vmem:[%s605_s2 + $0xc8] sm:$0xff]  ;;  %v166_v18 = vld [vmem:[%s606_s3 + $0xc0] sm:$0xff]  ;;  %v86_v20 = vld [vmem:[%s605_s2 + $0xb0] sm:$0xff] }
   0x7   :  { %121 = vmatpush.msra.mxu1 %v91_v11  ;;  %176 = vmatpush.msra.mxu2 %v168_v13  ;;  %v167_v19 = vld [vmem:[%s606_s3 + $0xc8] sm:$0xff]  ;;  %v87_v21 = vld [vmem:[%s605_s2 + $0xb8] sm:$0xff]  ;;  %v164_v22 = vld [vmem:[%s606_s3 + $0xb0] sm:$0xff]  ;;  %v476_v37 = vpop.eup %318 }
   0x8   :  { %199 = vmatpush.msra.mxu3 %v169_v14  ;;  %99 = vmatpush.msra.mxu0 %v88_v16  ;;  %v165_v23 = vld [vmem:[%s606_s3 + $0xb8] sm:$0xff]  ;;  %v84_v25 = vld [vmem:[%s605_s2 + $0xa0] sm:$0xff]  ;;  %v85_v26 = vld [vmem:[%s605_s2 + $0xa8] sm:$0xff]  ;;  %v26_v45 = vmul.f32 128.0, %v476_v37  ;;  %vm30_vm0 = vweird.f32 %v476_v37 }
   0x9   :  { %122 = vmatpush.msra.mxu1 %v89_v17  ;;  %177 = vmatpush.msra.mxu2 %v166_v18  ;;  %v162_v27 = vld [vmem:[%s606_s3 + $0xa0] sm:$0xff]  ;;  %v163_v28 = vld [vmem:[%s606_s3 + $0xa8] sm:$0xff]  ;;  %v82_v29 = vld [vmem:[%s605_s2 + $0x90] sm:$0xff] }
   0xa   :  { %200 = vmatpush.msra.mxu3 %v167_v19  ;;  %100 = vmatpush.msra.mxu0 %v86_v20  ;;  %v83_v30 = vld [vmem:[%s605_s2 + $0x98] sm:$0xff]  ;;  %v160_v31 = vld [vmem:[%s606_s3 + $0x90] sm:$0xff]  ;;  %v80_v33 = vld [vmem:[%s605_s2 + $0x80] sm:$0xff]  ;;  %v27_v54 = vsub.f32 1.0, %v26_v45 }
   0xb   :  { %123 = vmatpush.msra.mxu1 %v87_v21  ;;  %178 = vmatpush.msra.mxu2 %v164_v22  ;;  %v161_v32 = vld [vmem:[%s606_s3 + $0x98] sm:$0xff]  ;;  %v81_v34 = vld [vmem:[%s605_s2 + $0x88] sm:$0xff]  ;;  %v158_v35 = vld [vmem:[%s606_s3 + $0x80] sm:$0xff] }
   0xc   :  { %23 = vadd.xlane.f32.xlu0 %v20_v15  ;;  %201 = vmatpush.msra.mxu3 %v165_v23  ;;  %v159_v36 = vld [vmem:[%s606_s3 + $0x88] sm:$0xff]  ;;  %v78_v38 = vld [vmem:[%s605_s2 + $0x70] sm:$0xff]  ;;  %v79_v39 = vld [vmem:[%s605_s2 + $0x78] sm:$0xff]  ;;  %v28_v63 = vmul.f32 %v476_v37, %v27_v54 }
   0xd   :  { %101 = vmatpush.msra.mxu0 %v84_v25  ;;  %124 = vmatpush.msra.mxu1 %v85_v26  ;;  %v156_v40 = vld [vmem:[%s606_s3 + $0x70] sm:$0xff]  ;;  %v157_v41 = vld [vmem:[%s606_s3 + $0x78] sm:$0xff]  ;;  %v76_v42 = vld [vmem:[%s605_s2 + $0x60] sm:$0xff] }
   0xe   :  { %179 = vmatpush.msra.mxu2 %v162_v27  ;;  %202 = vmatpush.msra.mxu3 %v163_v28  ;;  %v77_v43 = vld [vmem:[%s605_s2 + $0x68] sm:$0xff]  ;;  %v154_v44 = vld [vmem:[%s606_s3 + $0x60] sm:$0xff]  ;;  %v74_v47 = vld [vmem:[%s605_s2 + $0x50] sm:$0xff]  ;;  %v29_v9 = vadd.f32 %v476_v37, %v28_v63 }
   0xf   :  { %102 = vmatpush.msra.mxu0 %v82_v29  ;;  %125 = vmatpush.msra.mxu1 %v83_v30  ;;  %v155_v46 = vld [vmem:[%s606_s3 + $0x68] sm:$0xff]  ;;  %v75_v48 = vld [vmem:[%s605_s2 + $0x58] sm:$0xff]  ;;  %v152_v49 = vld [vmem:[%s606_s3 + $0x50] sm:$0xff] }
  0x10   :  { %180 = vmatpush.msra.mxu2 %v160_v31  ;;  %203 = vmatpush.msra.mxu3 %v161_v32  ;;  %v153_v50 = vld [vmem:[%s606_s3 + $0x58] sm:$0xff]  ;;  %v72_v51 = vld [vmem:[%s605_s2 + $0x40] sm:$0xff]  ;;  %v73_v52 = vld [vmem:[%s605_s2 + $0x48] sm:$0xff]  ;;  %v31_v11 = vsel %vm30_vm0, %v476_v37, %v29_v9 }
  0x11   :  { %103 = vmatpush.msra.mxu0 %v80_v33  ;;  %126 = vmatpush.msra.mxu1 %v81_v34  ;;  %v150_v53 = vld [vmem:[%s606_s3 + $0x40] sm:$0xff]  ;;  %v151_v55 = vld [vmem:[%s606_s3 + $0x48] sm:$0xff]  ;;  %v70_v56 = vld [vmem:[%s605_s2 + $0x30] sm:$0xff] }
  0x12   :  { %181 = vmatpush.msra.mxu2 %v158_v35  ;;  %204 = vmatpush.msra.mxu3 %v159_v36  ;;  %v71_v57 = vld [vmem:[%s605_s2 + $0x38] sm:$0xff]  ;;  %v148_v58 = vld [vmem:[%s606_s3 + $0x30] sm:$0xff]  ;;  %v68_v60 = vld [vmem:[%s605_s2 + $0x20] sm:$0xff] }
  0x13   :  { %104 = vmatpush.msra.mxu0 %v78_v38  ;;  %127 = vmatpush.msra.mxu1 %v79_v39  ;;  %v149_v59 = vld [vmem:[%s606_s3 + $0x38] sm:$0xff]  ;;  %v69_v61 = vld [vmem:[%s605_s2 + $0x28] sm:$0xff]  ;;  %v146_v62 = vld [vmem:[%s606_s3 + $0x20] sm:$0xff] }
  0x14   :  { %182 = vmatpush.msra.mxu2 %v156_v40  ;;  %205 = vmatpush.msra.mxu3 %v157_v41  ;;  %v147_v1 = vld [vmem:[%s606_s3 + $0x28] sm:$0xff]  ;;  %v66_v2 = vld [vmem:[%s605_s2 + $0x10] sm:$0xff]  ;;  %v67_v3 = vld [vmem:[%s605_s2 + $0x18] sm:$0xff] }
  0x15   :  { %105 = vmatpush.msra.mxu0 %v76_v42  ;;  %128 = vmatpush.msra.mxu1 %v77_v43  ;;  %v144_v4 = vld [vmem:[%s606_s3 + $0x10] sm:$0xff]  ;;  %v145_v5 = vld [vmem:[%s606_s3 + $0x18] sm:$0xff]  ;;  %v64_v6 = vld [vmem:[%s605_s2] sm:$0xff] }
  0x16   :  { %183 = vmatpush.msra.mxu2 %v154_v44  ;;  %206 = vmatpush.msra.mxu3 %v155_v46  ;;  %v65_v7 = vld [vmem:[%s605_s2 + $0x8] sm:$0xff]  ;;  %v142_v8 = vld [vmem:[%s606_s3] sm:$0xff] }
  0x17   :  { %106 = vmatpush.msra.mxu0 %v74_v47  ;;  %129 = vmatpush.msra.mxu1 %v75_v48  ;;  %v143_v10 = vld [vmem:[%s606_s3 + $0x8] sm:$0xff]  ;;  %v317_v27 = vld [vmem:[%s607_s1] ss:$0 sm:$0xff] }
  0x18   :  { %184 = vmatpush.msra.mxu2 %v152_v49  ;;  %207 = vmatpush.msra.mxu3 %v153_v50 }
  0x19   :  { %107 = vmatpush.msra.mxu0 %v72_v51  ;;  %130 = vmatpush.msra.mxu1 %v73_v52 }
  0x1a   :  { %185 = vmatpush.msra.mxu2 %v150_v53  ;;  %208 = vmatpush.msra.mxu3 %v151_v55 }
  0x1b   :  { %108 = vmatpush.msra.mxu0 %v70_v56  ;;  %131 = vmatpush.msra.mxu1 %v71_v57 }
  0x1c   :  { %186 = vmatpush.msra.mxu2 %v148_v58  ;;  %209 = vmatpush.msra.mxu3 %v149_v59 }
  0x1d   :  { %109 = vmatpush.msra.mxu0 %v68_v60  ;;  %132 = vmatpush.msra.mxu1 %v69_v61 }
  0x1e   :  { %187 = vmatpush.msra.mxu2 %v146_v62  ;;  %210 = vmatpush.msra.mxu3 %v147_v1 }
  0x1f   :  { %110 = vmatpush.msra.mxu0 %v66_v2  ;;  %133 = vmatpush.msra.mxu1 %v67_v3 }
  0x20   :  { %188 = vmatpush.msra.mxu2 %v144_v4  ;;  %211 = vmatpush.msra.mxu3 %v145_v5 }
  0x21   :  { %111 = vmatpush.msra.mxu0 %v64_v6  ;;  %134 = vmatpush.msra.mxu1 %v65_v7 }
  0x22   :  { %189 = vmatpush.msra.mxu2 %v142_v8  ;;  %212 = vmatpush.msra.mxu3 %v143_v10 }
  0x77   :  { %v22_v13 = vpop.xlane.xlu0 %21 }
  0x78   :  { %v32_v14 = vmul.f32 %v31_v11, %v22_v13 }
  0x7a   :  { %v34_v15 = vadd.f32 1e-05, %v32_v14 }
  0x7c   :  { %320 = vrsqrt.f32 %v34_v15  ;;  %vm42_vm2 = vweird.f32 %v34_v15 }
  0x7f   :  { %v24_v16 = vpop.xlane.xlu0 %23 }
  0x80   :  { %v33_v17 = vmul.f32 %v31_v11, %v24_v16 }
  0x82   :  { %v321_v18 = vpop.eup %320  ;;  %v35_v19 = vadd.f32 1e-05, %v33_v17 }
  0x83   :  { %v37_v20 = vmul.f32 %v321_v18, %v34_v15  ;;  %vm43_vm1 = vweird.f32 %v321_v18 }
  0x84   :  { %322 = vrsqrt.f32 %v35_v19  ;;  %vm44_vm3 = vmor %vm42_vm2, %vm43_vm1  ;;  %vm52_vm5 = vweird.f32 %v35_v19 }
  0x85   :  { %v38_v21 = vmul.f32 %v321_v18, %v37_v20 }
  0x87   :  { %v39_v22 = vmul.f32 0.5, %v38_v21 }
  0x89   :  { %v40_v23 = vsub.f32 1.5, %v39_v22 }
  0x8a   :  { %v323_v24 = vpop.eup %322 }
  0x8b   :  { %v41_v25 = vmul.f32 %v321_v18, %v40_v23  ;;  %v47_v26 = vmul.f32 %v323_v24, %v35_v19  ;;  %vm53_vm4 = vweird.f32 %v323_v24 }
  0x8c   :  { %vm54_vm6 = vmor %vm52_vm5, %vm53_vm4 }
  0x8d   :  { %v45_v28 = vsel %vm44_vm3, %v321_v18, %v41_v25  ;;  %v48_v29 = vmul.f32 %v323_v24, %v47_v26 }
  0x8e   :  { %v56_v30 = vmul.f32 %v45_v28, %v369_v0 }
  0x8f   :  { %v49_v31 = vmul.f32 0.5, %v48_v29 }
  0x90   :  { %v62_v32 = vmul.f32 %v317_v27, %v56_v30 }
  0x91   :  { %v50_v33 = vsub.f32 1.5, %v49_v31 }
  0x92   :  { %112 = vmatmul.f32.vlgmr.msra.gmra.mxu0 %v62_v32  ;;  %135 = vmatmul.f32.vlgmr.msra.gmra.mxu1 %v62_v32 }
  0x93   :  { %v51_v34 = vmul.f32 %v323_v24, %v50_v33  ;;  %190 = vmatmul.f32.vlgmr.msra.gmra.mxu2 %v62_v32  ;;  %213 = vmatmul.f32.vlgmr.msra.gmra.mxu3 %v62_v32 }
  0x95   :  { %v55_v35 = vsel %vm54_vm6, %v323_v24, %v51_v34 }
  0x96   :  { %v57_v36 = vmul.f32 %v55_v35, %v406_v12 }
  0x98   :  { %v63_v37 = vmul.f32 %v317_v27, %v57_v36 }
  0x9a   :  { %115 = vmatmul.f32.gmra.mxu0 %v63_v37  ;;  %138 = vmatmul.f32.gmra.mxu1 %v63_v37 }
  0x9b   :  { %193 = vmatmul.f32.gmra.mxu2 %v63_v37  ;;  %216 = vmatmul.f32.gmra.mxu3 %v63_v37 }
 0x10f   :  { %v113_v0 = vpop.f32.mrf.mxu0  ;;  %v136_v38 = vpop.f32.mrf.mxu1 }
 0x110   :  { %v312_v39 = vmul.f32 -1.442695, %v113_v0  ;;  %v313_v40 = vmul.f32 -1.442695, %v136_v38 }
 0x112   :  { %324 = vpow2.f32 %v312_v39 }
 0x113   :  { %326 = vpow2.f32 %v313_v40 }
 0x116   :  { %v191_v10 = vpop.f32.mrf.mxu2  ;;  %v214_v20 = vpop.f32.mrf.mxu3 }
 0x117   :  { %v584_v41 = vpop.f32.mrf.mxu0  ;;  %v586_v42 = vpop.f32.mrf.mxu1 }
 0x118   :  { %v325_v43 = vpop.eup %324  ;;  %v314_v44 = vmul.f32 -1.442695, %v584_v41  ;;  %v315_v46 = vmul.f32 -1.442695, %v586_v42 }
 0x119   :  { %v327_v45 = vpop.eup %326  ;;  %v232_v12 = vadd.f32 1.0, %v325_v43 }
 0x11a   :  { %v233_v47 = vadd.f32 1.0, %v327_v45  ;;  %328 = vpow2.f32 %v314_v44 }
 0x11b   :  { %330 = vrcp.f32 %v232_v12  ;;  %v245_v57 = vand.u32 2147483647, %v232_v12  ;;  %v247_v58 = vand.u32 2147483648, %v232_v12  ;;  %vm241_vm9 = vweird.f32 %v232_v12 }
 0x11c   :  { %332 = vrcp.f32 %v233_v47  ;;  %v262_v61 = vand.u32 2147483648, %v233_v47  ;;  %v260_v63 = vand.u32 2147483647, %v233_v47  ;;  %vm256_vm11 = vweird.f32 %v233_v47 }
 0x11d   :  { %334 = vpow2.f32 %v315_v46  ;;  %v248_v3 = vor.u32 1.1754944e-38, %v247_v58  ;;  %vm246_vm12 = vcmp.eq.f32.partialorder %v245_v57, 8.507059e+37 }
 0x11e   :  { %v263_v6 = vor.u32 1.1754944e-38, %v262_v61  ;;  %vm261_vm14 = vcmp.eq.f32.partialorder %v260_v63, 8.507059e+37  ;;  %v194_v36 = vpop.f32.mrf.mxu2  ;;  %v217_v39 = vpop.f32.mrf.mxu3 }
 0x120   :  { %v329_v48 = vpop.eup %328 }
 0x121   :  { %v331_v49 = vpop.eup %330  ;;  %v234_v50 = vadd.f32 1.0, %v329_v48 }
 0x122   :  { %v333_v51 = vpop.eup %332  ;;  %v237_v52 = vmul.f32 %v331_v49, %v232_v12  ;;  %vm242_vm7 = vweird.f32 %v331_v49 }
 0x123   :  { %v335_v53 = vpop.eup %334  ;;  %v252_v54 = vmul.f32 %v333_v51, %v233_v47  ;;  %336 = vrcp.f32 %v234_v50  ;;  %vm257_vm8 = vweird.f32 %v333_v51  ;;  %vm243_vm10 = vmor %vm241_vm9, %vm242_vm7  ;;  %v277_v17 = vand.u32 2147483648, %v234_v50 }
 0x124   :  { %v238_v55 = vsub.f32 1.0, %v237_v52  ;;  %v235_v56 = vadd.f32 1.0, %v335_v53  ;;  %vm258_vm13 = vmor %vm256_vm11, %vm257_vm8  ;;  %v275_v22 = vand.u32 2147483647, %v234_v50  ;;  %vm271_vm0 = vweird.f32 %v234_v50 }
 0x125   :  { %v253_v59 = vsub.f32 1.0, %v252_v54  ;;  %v278_v27 = vor.u32 1.1754944e-38, %v277_v17 }
 0x126   :  { %v239_v60 = vmul.f32 %v331_v49, %v238_v55  ;;  %338 = vrcp.f32 %v235_v56  ;;  %v292_v26 = vand.u32 2147483648, %v235_v56  ;;  %v290_v29 = vand.u32 2147483647, %v235_v56 }
 0x127   :  { %v254_v62 = vmul.f32 %v333_v51, %v253_v59  ;;  %vm276_vm3 = vcmp.eq.f32.partialorder %v275_v22, 8.507059e+37  ;;  %vm286_vm4 = vweird.f32 %v235_v56 }
 0x128   :  { %v240_v1 = vadd.f32 %v331_v49, %v239_v60  ;;  %v293_v34 = vor.u32 1.1754944e-38, %v292_v26  ;;  %vm291_vm6 = vcmp.eq.f32.partialorder %v290_v29, 8.507059e+37 }
 0x129   :  { %v337_v2 = vpop.eup %336  ;;  %v255_v4 = vadd.f32 %v333_v51, %v254_v62 }
 0x12a   :  { %v244_v5 = vsel %vm243_vm10, %v331_v49, %v240_v1  ;;  %v267_v7 = vmul.f32 %v337_v2, %v234_v50  ;;  %vm272_vm15 = vweird.f32 %v337_v2 }
 0x12b   :  { %v249_v8 = vsel %vm246_vm12, %v248_v3, %v244_v5  ;;  %v259_v9 = vsel %vm258_vm13, %v333_v51, %v255_v4  ;;  %vm273_vm1 = vmor %vm271_vm0, %vm272_vm15 }
 0x12c   :  { %v339_v11 = vpop.eup %338  ;;  %v296_v13 = vmul.f32 %v249_v8, %v113_v0  ;;  %v264_v14 = vsel %vm261_vm14, %v263_v6, %v259_v9  ;;  %v268_v15 = vsub.f32 1.0, %v267_v7 }
 0x12d   :  { %v297_v16 = vmul.f32 %v264_v14, %v136_v38  ;;  %v282_v18 = vmul.f32 %v339_v11, %v235_v56  ;;  %vm287_vm2 = vweird.f32 %v339_v11 }
 0x12e   :  { %v300_v19 = vmul.f32 %v296_v13, %v191_v10  ;;  %v269_v21 = vmul.f32 %v337_v2, %v268_v15  ;;  %vm288_vm5 = vmor %vm286_vm4, %vm287_vm2 }
 0x12f   :  { %v301_v23 = vmul.f32 %v297_v16, %v214_v20  ;;  %v283_v24 = vsub.f32 1.0, %v282_v18 }
 0x130   :  { %304 = vst [vmem:[%s608_s4] sm:$0xff] %v300_v19  ;;  %v270_v25 = vadd.f32 %v337_v2, %v269_v21 }
 0x131   :  { %305 = vst [vmem:[%s608_s4 + $0x8] sm:$0xff] %v301_v23  ;;  %v284_v28 = vmul.f32 %v339_v11, %v283_v24 }
 0x132   :  { %v274_v30 = vsel %vm273_vm1, %v337_v2, %v270_v25 }
 0x133   :  { %v279_v31 = vsel %vm276_vm3, %v278_v27, %v274_v30  ;;  %v285_v32 = vadd.f32 %v339_v11, %v284_v28 }
 0x134   :  { %v298_v33 = vmul.f32 %v279_v31, %v584_v41 }
 0x135   :  { %v289_v35 = vsel %vm288_vm5, %v339_v11, %v285_v32 }
 0x136   :  { %v294_v37 = vsel %vm291_vm6, %v293_v34, %v289_v35  ;;  %v302_v0 = vmul.f32 %v298_v33, %v194_v36 }
 0x137   :  { %v299_v38 = vmul.f32 %v294_v37, %v586_v42 }
 0x138   :  { %306 = vst [vmem:[%s608_s4 + $0x10] sm:$0xff] %v302_v0 }
 0x139   :  { %v303_v40 = vmul.f32 %v299_v38, %v217_v39 }
 0x13b   :  { %307 = vst [vmem:[%s608_s4 + $0x18] sm:$0xff] %v303_v40 }

// kernel: _lambda_.6
= control target key start
LH: loop header
LB: loop body
LE: loop exit
PB: predicated region body
PF: predicated region fallthrough
CT: control target
= control target key end

     0   :  { %s726_s12 = smov 0   ;;  %s875_s0 = inlined_call_operand.vmem [shape: f32[2,8,256], index: 0, kind: input, shape index: {}]   ;;  %s876_s1 = inlined_call_operand.vmem [shape: f32[1,8,32], index: 1, kind: input, shape index: {}]   ;;  %s877_s2 = inlined_call_operand.vmem [shape: f32[1,8,32], index: 2, kind: input, shape index: {}]   ;;  %s878_s3 = inlined_call_operand.vmem [shape: f32[2,8,128], index: 3, kind: output, shape index: {}]  }
   0x1 LB: > { %s634_s13 = sadd.s32 4294967295, %s696_s12   ;;  %p638_p0 = scmp.ge.s32.totalorder %s696_s12, 1  ;;  %s696_s12 = sphi %s726_s12, %s13_s12  }
   0x2   : > { %p137_p1 = scmp.lt.s32.totalorder %s696_s12, 3 }
   0x4   : > { %p138_p2 = pnand %p638_p0, %p137_p1 }
   0x5   : > { %p160_p3 = scmp.lt.s32.totalorder (!%p138_p2), %s634_s13, 1  ;;  %s698_s18 = smov (!%p138_p2), 32  }
   0x6   : > { %141 = sbr.rel (%p138_p2) target bundleno = 1498 (0x5da), region = 32  ;;  %s699_s21 = smov (!%p138_p2), 16  }
   0x7   : > { %s701_s22 = smov (!%p138_p2), 96   ;;  %s702_s23 = smov (!%p138_p2), 112  }
   0x8   : > { %s703_s24 = smov (!%p138_p2), 64   ;;  %s704_s27 = smov (!%p138_p2), 48  }
   0x9   : > { %s705_s28 = smov (!%p138_p2), 80  }
   0xb   : > { %s882_s13 = smov (!%p160_p3, %s634_s13), 1  ;;  %v170_v2 = vld [vmem:[%s877_s2] sm:$0xff]  ;;  %v171_v3 = vlaneseq  ;;  %vm182_vm0 = vcmask 1047808   ;;  %v700_v7 = vmov 1.0   ;;  %vm242_vm2 = vcmask 261120  }
   0xc   : > { %s657_s14 = sshll.u32 %s882_s13, 4  ;;  %196 = vrot.lane.b32.xlu2 %v170_v2, %s699_s21  ;;  %v169_v23 = vld [vmem:[%s876_s1] sm:$0xff]  ;;  %vm271_vm6 = vcmask 64512   ;;  %s641_s29 = sshll.u32 %s882_s13, 3  ;;  %vm576_vm7 = vcmask 523264   ;;  %vm578_vm8 = vcmask 785408  }
   0xd   : > { %s164_s17 = scalar_lea.vmem %s875_s0, %s657_s14  ;;  %v753_v5 = vand.u32 127, %v171_v3  ;;  %v176_v44 = vshrl.u32 %v171_v3, 7  ;;  %s168_s5 = scalar_lea.vmem %s878_s3, %s641_s29 }
   0xe   : > { %v740_v0 = vld [vmem:[%s164_s17 + $0x8] sm:$0xff]  ;;  %v744_v1 = vld [vmem:[%s164_s17] sm:$0xff] }
   0xf   : > { %183 = vrot.lane.b32.xlu0 %v740_v0, %s698_s18  ;;  %vm173_vm1 = vcmp.lt.s32.totalorder %v753_v5, 16  ;;  %v194_v24 = vmul.f32 %v740_v0, %v169_v23  ;;  %v235_v25 = vmul.f32 %v744_v1, %v169_v23  ;;  %v642_v45 = vadd.s32 4294967293, %v176_v44 }
  0x10   : > { %v174_v8 = vsel %vm173_vm1, -1.0, %v700_v7  ;;  %vm177_vm3 = vcmp.le.s32.totalorder %v753_v5, %v176_v44 }
  0x11   : > { %vm179_vm4 = vcmp.ge.s32.totalorder %v753_v5, %v642_v45 }
  0x12   : > { %vm812_vm5 = vmand %vm177_vm3, %vm179_vm4 }
  0x17   : > { %228 = vrot.lane.b32.xlu0 %v744_v1, %s698_s18 }
  0x66   : > { %v767_v11 = vpop.permute.xlu2 %196 }
  0x81   : > { %v184_v4 = vpop.permute.xlu0 %183 }
  0x82   : > { %v185_v6 = vsel %vm182_vm0, %v184_v4, %v740_v0 }
  0x83   : > { %186 = vrot.lane.b32.xlu1 %v185_v6, %s698_s18 }
  0x89   : > { %v229_v9 = vpop.permute.xlu0 %228 }
  0x8a   : > { %v230_v10 = vsel %vm182_vm0, %v229_v9, %v744_v1 }
  0x8b   : > { %190 = vrot.lane.b32.xlu1 %v174_v8, %s699_s21  ;;  %231 = vrot.lane.b32.xlu2 %v230_v10, %s698_s18 }
  0x93   : > { %311 = vrot.lane.b32.xlu2 %v744_v1, %s701_s22 }
  0x9b   : > { %482 = vrot.lane.b32.xlu2 %v744_v1, %s698_s18 }
  0xe5   : > { %v232_v13 = vpop.permute.xlu2 %231 }
  0xe6   : > { %v233_v14 = vsel %vm182_vm0, %v232_v13, %v744_v1 }
  0xed   : > { %v312_v21 = vpop.permute.xlu2 %311 }
  0xf5   : > { %v187_v12 = vpop.permute.xlu1 %186  ;;  %v483_v22 = vpop.permute.xlu2 %482 }
  0xf6   : > { %v188_v15 = vsel %vm182_vm0, %v187_v12, %v740_v0 }
  0xfd   : > { %v773_v16 = vpop.permute.xlu1 %190 }
  0xfe   : > { %v193_v17 = vmul.f32 %v773_v16, %v188_v15  ;;  %v234_v18 = vmul.f32 %v233_v14, %v773_v16 }
 0x100   : > { %v199_v19 = vmul.f32 %v767_v11, %v193_v17  ;;  %v236_v20 = vmul.f32 %v234_v18, %v767_v11 }
 0x102   : > { %201 = vrot.lane.b32.xlu0 %v199_v19, %s702_s23  ;;  %238 = vrot.lane.b32.xlu1 %v236_v20, %s702_s23 }
 0x10a   : > { %206 = vrot.lane.b32.xlu0 %v740_v0, %s701_s22  ;;  %391 = vrot.lane.b32.xlu1 %v744_v1, %s703_s24 }
 0x112   : > { %314 = vrot.lane.b32.xlu0 %v312_v21, %s698_s18 }
 0x11a   : > { %485 = vrot.lane.b32.xlu0 %v483_v22, %s698_s18 }
 0x174   : > { %v239_v26 = vpop.permute.xlu1 %238  ;;  %v202_v27 = vpop.permute.xlu0 %201 }
 0x175   : > { %v204_v28 = vadd.f32 %v202_v27, %v194_v24  ;;  %v241_v29 = vadd.f32 %v239_v26, %v235_v25 }
 0x177   : > { %643 = vmatpush.xpose.msk.msra.mxu0 %vm242_vm2, %v204_v28  ;;  %646 = vmatpush.xpose.msk.msra.mxu2 %vm242_vm2, %v204_v28 }
 0x17a   : > { %644 = vmatmul.msk.f32.vlgmr.msra.gmra.mxu0 %vm242_vm2, %v241_v29 }
 0x17c   : > { %v392_v30 = vpop.permute.xlu1 %391  ;;  %v207_v31 = vpop.permute.xlu0 %206 }
 0x17d   : > { %394 = vrot.lane.b32.xlu2 %v392_v30, %s698_s18  ;;  %209 = vrot.lane.b32.xlu1 %v207_v31, %s698_s18 }
 0x184   : > { %v315_v32 = vpop.permute.xlu0 %314 }
 0x185   : > { %v316_v33 = vsel %vm182_vm0, %v315_v32, %v312_v21 }
 0x186   : > { %317 = vrot.lane.b32.xlu1 %v316_v33, %s698_s18 }
 0x18c   : > { %v486_v34 = vpop.permute.xlu0 %485 }
 0x18d   : > { %v487_v35 = vsel %vm182_vm0, %v486_v34, %v483_v22 }
 0x18e   : > { %488 = vrot.lane.b32.xlu1 %v487_v35, %s698_s18 }
 0x1d7   : > { %v395_v36 = vpop.permute.xlu2 %394 }
 0x1d8   : > { %v396_v37 = vsel %vm182_vm0, %v395_v36, %v392_v30 }
 0x1d9   : > { %397 = vrot.lane.b32.xlu0 %v396_v37, %s698_s18 }
 0x1e1   : > { %217 = vrot.lane.b32.xlu0 %v169_v23, %s698_s18 }
 0x1ef   : > { %v210_v38 = vpop.permute.xlu1 %209 }
 0x1f0   : > { %v211_v39 = vsel %vm182_vm0, %v210_v38, %v207_v31 }
 0x1f1   : > { %212 = vrot.lane.b32.xlu2 %v211_v39, %s698_s18 }
 0x1f7   : > { %v266_v46 = vpop.f32.mrf.mxu0 }
 0x1f8   : > { %v318_v40 = vpop.permute.xlu1 %317  ;;  %v269_v47 = vmul.f32 0.17677669, %v266_v46 }
 0x1f9   : > { %v319_v41 = vsel %vm182_vm0, %v318_v40, %v312_v21 }
 0x1fa   : > { %v320_v42 = vmul.f32 %v319_v41, %v773_v16  ;;  %v270_v49 = vsel %vm812_vm5, %v269_v47, -inf }
 0x1fb   : > { %v272_v50 = vsel %vm271_vm6, %v270_v49, -inf }
 0x1fc   : > { %v322_v43 = vmul.f32 %v320_v42, %v767_v11 }
 0x1fe   : > { %324 = vrot.lane.b32.xlu1 %v322_v43, %s699_s21 }
 0x200   : > { %v489_v59 = vpop.permute.xlu1 %488 }
 0x201   : > { %v490_v60 = vsel %vm182_vm0, %v489_v59, %v483_v22 }
 0x202   : > { %v491_v61 = vmul.f32 %v490_v60, %v773_v16 }
 0x204   : > { %v496_v62 = vmul.f32 %v491_v61, %v767_v11 }
 0x206   : > { %401 = vrot.lane.b32.xlu1 %v169_v23, %s703_s24 }
 0x21a   : > { %273 = vmax.xlane.f32.xlu2 %v272_v50 }
 0x232   : > { %283 = vrot.lane.b32.xlu2 %v740_v0, %s703_s24 }
 0x24b   : > { %v213_v51 = vpop.permute.xlu2 %212  ;;  %v398_v52 = vpop.permute.xlu0 %397 }
 0x24c   : > { %v214_v53 = vsel %vm182_vm0, %v213_v51, %v207_v31  ;;  %v399_v54 = vsel %vm182_vm0, %v398_v52, %v392_v30 }
 0x24d   : > { %v215_v55 = vmul.f32 %v214_v53, %v773_v16  ;;  %v400_v56 = vmul.f32 %v399_v54, %v773_v16 }
 0x24f   : > { %v221_v57 = vmul.f32 %v215_v55, %v767_v11  ;;  %v405_v58 = vmul.f32 %v400_v56, %v767_v11 }
 0x251   : > { %223 = vrot.lane.b32.xlu0 %v221_v57, %s699_s21  ;;  %407 = vrot.lane.b32.xlu1 %v405_v58, %s704_s27 }
 0x253   : > { %v218_v63 = vpop.permute.xlu0 %217 }
 0x254   : > { %v321_v2 = vmul.f32 %v744_v1, %v218_v63  ;;  %v220_v11 = vmul.f32 %v218_v63, %v740_v0 }
 0x259   : > { %492 = vrot.lane.b32.xlu0 %v169_v23, %s701_s22 }
 0x261   : > { %498 = vrot.lane.b32.xlu0 %v496_v62, %s705_s28 }
 0x270   : > { %v325_v3 = vpop.permute.xlu1 %324 }
 0x271   : > { %v327_v4 = vadd.f32 %v325_v3, %v321_v2 }
 0x273   : > { %329 = vrot.lane.b32.xlu0 %v327_v4, %s701_s22 }
 0x278   : > { %v402_v10 = vpop.permute.xlu1 %401 }
 0x279   : > { %v404_v14 = vmul.f32 %v402_v10, %v744_v1 }
 0x28d   : > { %v274_v5 = vpop.xlane.xlu2 %273 }
 0x28e   : > { %v275_v6 = vsub.f32 %v270_v49, %v274_v5 }
 0x290   : > { %v276_v7 = vmul.f32 1.442695, %v275_v6 }
 0x292   : > { %674 = vpow2.f32 %v276_v7 }
 0x295   : > { %v284_v22 = vpop.permute.xlu2 %283 }
 0x296   : > { %304 = vmatpush.msra.mxu1 %v284_v22  ;;  %384 = vmatpush.msra.mxu3 %v284_v22 }
 0x298   : > { %v675_v8 = vpop.eup %674 }
 0x299   : > { %v278_v9 = vsel %vm271_vm6, %v675_v8, 0.0 }
 0x29a   : > { %279 = vadd.xlane.f32.xlu1 %v278_v9 }
 0x2c3   : > { %v224_v12 = vpop.permute.xlu0 %223  ;;  %v408_v15 = vpop.permute.xlu1 %407 }
 0x2c4   : > { %v226_v13 = vadd.f32 %v224_v12, %v220_v11  ;;  %v410_v17 = vadd.f32 %v408_v15, %v404_v14 }
 0x2c6   : > { %415 = vrot.lane.b32.xlu0 %v226_v13, %s701_s22 }
 0x2cb   : > { %v493_v16 = vpop.permute.xlu0 %492 }
 0x2cc   : > { %v495_v18 = vmul.f32 %v493_v16, %v744_v1 }
 0x2ce   : > { %412 = vrot.lane.b32.xlu0 %v410_v17, %s703_s24 }
 0x2d3   : > { %v499_v19 = vpop.permute.xlu0 %498 }
 0x2d4   : > { %v501_v20 = vadd.f32 %v499_v19, %v495_v18 }
 0x2d6   : > { %503 = vrot.lane.b32.xlu0 %v501_v20, %s698_s18 }
 0x2e5   : > { %v330_v21 = vpop.permute.xlu0 %329 }
 0x2e6   : > { %647 = vmatmul.msk.f32.vlgmr.msra.gmra.mxu2 %vm242_vm2, %v330_v21 }
 0x30d   : > { %v280_v23 = vpop.xlane.xlu1 %279 }
 0x30e   : > { %676 = vrcp.f32 %v280_v23 }
 0x314   : > { %v677_v24 = vpop.eup %676 }
 0x315   : > { %v282_v25 = vmul.f32 %v677_v24, %v675_v8 }
 0x317   : > { %645 = vmatmul.msk.f32.vlgmr.msra.gmra.mxu1 %vm271_vm6, %v282_v25 }
 0x338   : > { %v416_v26 = vpop.permute.xlu0 %415 }
 0x339   : > { %649 = vmatpush.xpose.msk.msrb.mxu1 %vm242_vm2, %v416_v26  ;;  %652 = vmatpush.xpose.msk.msrb.mxu0 %vm242_vm2, %v416_v26 }
 0x340   : > { %v413_v1 = vpop.permute.xlu0 %412 }
 0x341   : > { %650 = vmatmul.msk.f32.vlgmr.msrb.gmra.mxu1 %vm242_vm2, %v413_v1 }
 0x348   : > { %v504_v27 = vpop.permute.xlu0 %503 }
 0x349   : > { %653 = vmatmul.msk.f32.vlgmr.msrb.gmra.mxu0 %vm242_vm2, %v504_v27 }
 0x369   : > { %v350_v28 = vpop.f32.mrf.mxu2 }
 0x36a   : > { %v353_v29 = vmul.f32 0.17677669, %v350_v28 }
 0x36c   : > { %v354_v30 = vsel %vm812_vm5, %v353_v29, -inf }
 0x36d   : > { %v355_v31 = vsel %vm271_vm6, %v354_v30, -inf }
 0x36e   : > { %356 = vmax.xlane.f32.xlu2 %v355_v31 }
 0x394   : > { %v306_v32 = vpop.f32.mrf.mxu1 }
 0x3be   : > { %v438_v33 = vpop.f32.mrf.mxu1 }
 0x3bf   : > { %v441_v34 = vmul.f32 0.17677669, %v438_v33 }
 0x3c1   : > { %v442_v35 = vsel %vm812_vm5, %v441_v34, -inf }
 0x3c2   : > { %v443_v36 = vsel %vm271_vm6, %v442_v35, -inf }
 0x3c3   : > { %444 = vmax.xlane.f32.xlu0 %v443_v36 }
 0x3c6   : > { %v524_v37 = vpop.f32.mrf.mxu0 }
 0x3c7   : > { %v527_v38 = vmul.f32 0.17677669, %v524_v37 }
 0x3c9   : > { %v528_v39 = vsel %vm812_vm5, %v527_v38, -inf }
 0x3ca   : > { %v529_v40 = vsel %vm271_vm6, %v528_v39, -inf }
 0x3cb   : > { %530 = vmax.xlane.f32.xlu1 %v529_v40 }
 0x3e1   : > { %v357_v41 = vpop.xlane.xlu2 %356 }
 0x3e2   : > { %v358_v42 = vsub.f32 %v354_v30, %v357_v41 }
 0x3e4   : > { %v359_v43 = vmul.f32 1.442695, %v358_v42 }
 0x3e6   : > { %678 = vpow2.f32 %v359_v43 }
 0x3ec   : > { %v679_v44 = vpop.eup %678 }
 0x3ed   : > { %v361_v45 = vsel %vm271_vm6, %v679_v44, 0.0 }
 0x3ee   : > { %362 = vadd.xlane.f32.xlu1 %v361_v45 }
 0x436   : > { %v445_v46 = vpop.xlane.xlu0 %444 }
 0x437   : > { %v446_v50 = vsub.f32 %v442_v35, %v445_v46 }
 0x439   : > { %v447_v52 = vmul.f32 1.442695, %v446_v50 }
 0x43e   : > { %v531_v47 = vpop.xlane.xlu1 %530 }
 0x43f   : > { %v532_v49 = vsub.f32 %v528_v39, %v531_v47 }
 0x441   : > { %v533_v51 = vmul.f32 1.442695, %v532_v49 }
 0x443   : > { %680 = vpow2.f32 %v533_v51 }
 0x444   : > { %682 = vpow2.f32 %v447_v52 }
 0x449   : > { %v681_v48 = vpop.eup %680 }
 0x44a   : > { %v535_v53 = vsel %vm271_vm6, %v681_v48, 0.0  ;;  %v683_v54 = vpop.eup %682 }
 0x44b   : > { %536 = vadd.xlane.f32.xlu1 %v535_v53  ;;  %v449_v55 = vsel %vm271_vm6, %v683_v54, 0.0 }
 0x453   : > { %450 = vadd.xlane.f32.xlu1 %v449_v55 }
 0x461   : > { %v363_v56 = vpop.xlane.xlu1 %362 }
 0x462   : > { %684 = vrcp.f32 %v363_v56 }
 0x468   : > { %v685_v57 = vpop.eup %684 }
 0x469   : > { %v365_v58 = vmul.f32 %v685_v57, %v679_v44 }
 0x46b   : > { %648 = vmatmul.msk.f32.vlgmr.msra.gmra.mxu3 %vm271_vm6, %v365_v58 }
 0x46c   : > { %454 = vrot.lane.b32.xlu1 %v740_v0, %s698_s18 }
 0x4be   : > { %v537_v59 = vpop.xlane.xlu1 %536 }
 0x4bf   : > { %686 = vrcp.f32 %v537_v59 }
 0x4c5   : > { %v687_v61 = vpop.eup %686 }
 0x4c6   : > { %v451_v60 = vpop.xlane.xlu1 %450  ;;  %v539_v3 = vmul.f32 %v687_v61, %v681_v48 }
 0x4c7   : > { %688 = vrcp.f32 %v451_v60 }
 0x4cd   : > { %v689_v62 = vpop.eup %688 }
 0x4ce   : > { %v453_v2 = vmul.f32 %v689_v62, %v683_v54 }
 0x4de   : > { %v455_v63 = vpop.permute.xlu1 %454 }
 0x4df   : > { %475 = vmatpush.msrb.mxu3 %v455_v63  ;;  %558 = vmatpush.msrb.mxu2 %v455_v63 }
 0x4e0   : > { %651 = vmatmul.msk.f32.vlgmr.msrb.gmra.mxu3 %vm271_vm6, %v453_v2  ;;  %654 = vmatmul.msk.f32.vlgmr.msrb.gmra.mxu2 %vm271_vm6, %v539_v3 }
 0x4ee   : > { %v386_v4 = vpop.f32.mrf.mxu3 }
 0x4ef   : > { %564 = vrot.lane.b32.xlu2 %v386_v4, %s698_s18 }
 0x549   : > { %v565_v6 = vpop.permute.xlu2 %564 }
 0x54a   : > { %v575_v7 = vsel %vm242_vm2, %v306_v32, %v565_v6 }
 0x563   : > { %v477_v0 = vpop.f32.mrf.mxu3  ;;  %v560_v5 = vpop.f32.mrf.mxu2 }
 0x564   : > { %572 = vrot.lane.b32.xlu2 %v560_v5, %s701_s22  ;;  %568 = vrot.lane.b32.xlu0 %v477_v0, %s703_s24 }
 0x5be   : > { %v573_v9 = vpop.permute.xlu2 %572 }
 0x5d6   : > { %v569_v8 = vpop.permute.xlu0 %568 }
 0x5d7   : > { %v577_v10 = vsel %vm576_vm7, %v575_v7, %v569_v8 }
 0x5d8   : > { %v579_v11 = vsel %vm578_vm8, %v577_v10, %v573_v9 }
 0x5d9   : > { %580 = vst [vmem:[%s168_s5] sm:$0xff] %v579_v11 }
 0x5da PF: > { %s13_s12 = sadd.s32 1, %s696_s12  }
 0x5db   : > { %p10_p4 = scmp.ge.s32.totalorder %s13_s12, 4  }
 0x5dd   :  { %12 = sbr.rel (!%p10_p4) target bundleno = 1 (0x1), region = 62 }

// kernel: _lambda_.9
= control target key start
LH: loop header
LB: loop body
LE: loop exit
PB: predicated region body
PF: predicated region fallthrough
CT: control target
= control target key end

     0   :  { %s339_s0 = inlined_call_operand.vmem [shape: f32[16,256], index: 0, kind: input, shape index: {}]   ;;  %s340_s1 = inlined_call_operand.vmem [shape: f32[256,128], index: 1, kind: input, shape index: {}]   ;;  %s341_s2 = inlined_call_operand.vmem [shape: f32[16,128], index: 2, kind: input, shape index: {}]   ;;  %s342_s3 = inlined_call_operand.hbm [shape: f32[16,128], index: 3, kind: output, shape index: {}]  }
   0x1   :  { %v42_v0 = vld [vmem:[%s340_s1 + $0x78] sm:$0xff]  ;;  %v41_v2 = vld [vmem:[%s340_s1 + $0x70] sm:$0xff]  ;;  %v40_v4 = vld [vmem:[%s340_s1 + $0x68] sm:$0xff] }
   0x2   :  { %v58_v1 = vld [vmem:[%s340_s1 + $0xf8] sm:$0xff]  ;;  %138 = vmatpush.msra.mxu2 %v42_v0  ;;  %v57_v3 = vld [vmem:[%s340_s1 + $0xf0] sm:$0xff]  ;;  %v56_v5 = vld [vmem:[%s340_s1 + $0xe8] sm:$0xff]  ;;  %59 = vmatpush.msra.mxu0 %v42_v0 }
   0x3   :  { %154 = vmatpush.msra.mxu3 %v58_v1  ;;  %82 = vmatpush.msra.mxu1 %v58_v1  ;;  %v39_v6 = vld [vmem:[%s340_s1 + $0x60] sm:$0xff]  ;;  %v38_v8 = vld [vmem:[%s340_s1 + $0x58] sm:$0xff]  ;;  %v37_v10 = vld [vmem:[%s340_s1 + $0x50] sm:$0xff] }
   0x4   :  { %139 = vmatpush.msra.mxu2 %v41_v2  ;;  %v55_v7 = vld [vmem:[%s340_s1 + $0xe0] sm:$0xff]  ;;  %60 = vmatpush.msra.mxu0 %v41_v2  ;;  %v54_v9 = vld [vmem:[%s340_s1 + $0xd8] sm:$0xff]  ;;  %v53_v11 = vld [vmem:[%s340_s1 + $0xd0] sm:$0xff] }
   0x5   :  { %155 = vmatpush.msra.mxu3 %v57_v3  ;;  %83 = vmatpush.msra.mxu1 %v57_v3  ;;  %v36_v12 = vld [vmem:[%s340_s1 + $0x48] sm:$0xff]  ;;  %v35_v14 = vld [vmem:[%s340_s1 + $0x40] sm:$0xff] }
   0x6   :  { %140 = vmatpush.msra.mxu2 %v40_v4  ;;  %61 = vmatpush.msra.mxu0 %v40_v4  ;;  %v52_v13 = vld [vmem:[%s340_s1 + $0xc8] sm:$0xff]  ;;  %v51_v15 = vld [vmem:[%s340_s1 + $0xc0] sm:$0xff] }
   0x7   :  { %156 = vmatpush.msra.mxu3 %v56_v5  ;;  %84 = vmatpush.msra.mxu1 %v56_v5 }
   0x8   :  { %141 = vmatpush.msra.mxu2 %v39_v6  ;;  %62 = vmatpush.msra.mxu0 %v39_v6 }
   0x9   :  { %157 = vmatpush.msra.mxu3 %v55_v7  ;;  %85 = vmatpush.msra.mxu1 %v55_v7 }
   0xa   :  { %142 = vmatpush.msra.mxu2 %v38_v8  ;;  %63 = vmatpush.msra.mxu0 %v38_v8 }
   0xb   :  { %158 = vmatpush.msra.mxu3 %v54_v9  ;;  %86 = vmatpush.msra.mxu1 %v54_v9 }
   0xc   :  { %143 = vmatpush.msra.mxu2 %v37_v10  ;;  %64 = vmatpush.msra.mxu0 %v37_v10 }
   0xd   :  { %159 = vmatpush.msra.mxu3 %v53_v11  ;;  %87 = vmatpush.msra.mxu1 %v53_v11 }
   0xe   :  { %8 = vsyncpa [#allocation4], 0  ;;  %144 = vmatpush.msra.mxu2 %v36_v12  ;;  %v34_v16 = vld [vmem:[%s340_s1 + $0x38] sm:$0xff]  ;;  %65 = vmatpush.msra.mxu0 %v36_v12  ;;  %v33_v18 = vld [vmem:[%s340_s1 + $0x30] sm:$0xff]  ;;  %s199_s4 = smov [#allocation3]   ;;  %s200_s10 = smov 128  }
   0xf   :  { %160 = vmatpush.msra.mxu3 %v52_v13  ;;  %v50_v17 = vld [vmem:[%s340_s1 + $0xb8] sm:$0xff]  ;;  %88 = vmatpush.msra.mxu1 %v52_v13  ;;  %v49_v19 = vld [vmem:[%s340_s1 + $0xb0] sm:$0xff]  ;;  %v32_v20 = vld [vmem:[%s340_s1 + $0x28] sm:$0xff]  ;;  %s124_s5 = sshll.u32 %s199_s4, 4  ;;  %s201_s11 = smov 8   ;;  %s125_s5 = int_to_ptr.vmem [resolvable:$true] %s124_s5 }
  0x10   :  { %145 = vmatpush.msra.mxu2 %v35_v14  ;;  %66 = vmatpush.msra.mxu0 %v35_v14  ;;  %v48_v21 = vld [vmem:[%s340_s1 + $0xa8] sm:$0xff]  ;;  %v31_v22 = vld [vmem:[%s340_s1 + $0x20] sm:$0xff]  ;;  %v30_v24 = vld [vmem:[%s340_s1 + $0x18] sm:$0xff] }
  0x11   :  { %161 = vmatpush.msra.mxu3 %v51_v15  ;;  %89 = vmatpush.msra.mxu1 %v51_v15  ;;  %v47_v23 = vld [vmem:[%s340_s1 + $0xa0] sm:$0xff]  ;;  %v46_v25 = vld [vmem:[%s340_s1 + $0x98] sm:$0xff]  ;;  %v29_v26 = vld [vmem:[%s340_s1 + $0x10] sm:$0xff] }
  0x12   :  { %146 = vmatpush.msra.mxu2 %v34_v16  ;;  %67 = vmatpush.msra.mxu0 %v34_v16  ;;  %v45_v27 = vld [vmem:[%s340_s1 + $0x90] sm:$0xff]  ;;  %v28_v28 = vld [vmem:[%s340_s1 + $0x8] sm:$0xff]  ;;  %v27_v30 = vld [vmem:[%s340_s1] sm:$0xff] }
  0x13   :  { %162 = vmatpush.msra.mxu3 %v50_v17  ;;  %90 = vmatpush.msra.mxu1 %v50_v17  ;;  %v44_v29 = vld [vmem:[%s340_s1 + $0x88] sm:$0xff]  ;;  %v43_v31 = vld [vmem:[%s340_s1 + $0x80] sm:$0xff]  ;;  %v25_v32 = vld [vmem:[%s339_s0 + $0x10] sm:$0xff] }
  0x14   :  { %147 = vmatpush.msra.mxu2 %v33_v18  ;;  %68 = vmatpush.msra.mxu0 %v33_v18  ;;  %v26_v33 = vld [vmem:[%s339_s0 + $0x18] sm:$0xff]  ;;  %v23_v34 = vld [vmem:[%s339_s0] sm:$0xff]  ;;  %v24_v35 = vld [vmem:[%s339_s0 + $0x8] sm:$0xff]  ;;  %s126_s0 = sshll.u32 %s342_s3, 4  ;;  %s127_s0 = int_to_ptr.hbm [resolvable:$true] %s126_s0 }
  0x15   :  { %163 = vmatpush.msra.mxu3 %v49_v19  ;;  %91 = vmatpush.msra.mxu1 %v49_v19  ;;  %v114_v38 = vld [vmem:[%s341_s2] sm:$0xff]  ;;  %v115_v43 = vld [vmem:[%s341_s2 + $0x8] sm:$0xff] }
  0x16   :  { %148 = vmatpush.msra.mxu2 %v32_v20  ;;  %69 = vmatpush.msra.mxu0 %v32_v20 }
  0x17   :  { %164 = vmatpush.msra.mxu3 %v48_v21  ;;  %92 = vmatpush.msra.mxu1 %v48_v21 }
  0x18   :  { %149 = vmatpush.msra.mxu2 %v31_v22  ;;  %70 = vmatpush.msra.mxu0 %v31_v22 }
  0x19   :  { %165 = vmatpush.msra.mxu3 %v47_v23  ;;  %93 = vmatpush.msra.mxu1 %v47_v23 }
  0x1a   :  { %150 = vmatpush.msra.mxu2 %v30_v24  ;;  %71 = vmatpush.msra.mxu0 %v30_v24 }
  0x1b   :  { %166 = vmatpush.msra.mxu3 %v46_v25  ;;  %94 = vmatpush.msra.mxu1 %v46_v25 }
  0x1c   :  { %151 = vmatpush.msra.mxu2 %v29_v26  ;;  %72 = vmatpush.msra.mxu0 %v29_v26 }
  0x1d   :  { %167 = vmatpush.msra.mxu3 %v45_v27  ;;  %95 = vmatpush.msra.mxu1 %v45_v27 }
  0x1e   :  { %152 = vmatpush.msra.mxu2 %v28_v28  ;;  %73 = vmatpush.msra.mxu0 %v28_v28 }
  0x1f   :  { %168 = vmatpush.msra.mxu3 %v44_v29  ;;  %96 = vmatpush.msra.mxu1 %v44_v29 }
  0x20   :  { %153 = vmatpush.msra.mxu2 %v27_v30  ;;  %74 = vmatpush.msra.mxu0 %v27_v30 }
  0x21   :  { %169 = vmatpush.msra.mxu3 %v43_v31  ;;  %78 = vmatmul.f32.vlgmr.msra.gmra.mxu2 %v25_v32 }
  0x22   :  { %101 = vmatmul.f32.vlgmr.msra.gmra.mxu3 %v26_v33  ;;  %97 = vmatpush.msra.mxu1 %v43_v31 }
  0x23   :  { %75 = vmatmul.f32.vlgmr.msra.gmra.mxu0 %v23_v34  ;;  %98 = vmatmul.f32.vlgmr.msra.gmra.mxu1 %v24_v35 }
  0xa0   :  { %v76_v36 = vpop.f32.mrf.mxu0  ;;  %v99_v37 = vpop.f32.mrf.mxu1 }
  0xa1   :  { %v100_v39 = vadd.f32 %v99_v37, %v76_v36 }
  0xa3   :  { %v116_v40 = vadd.f32 %v114_v38, %v100_v39 }
  0xa4   :  { %v79_v41 = vpop.f32.mrf.mxu2 }
  0xa5   :  { %v102_v42 = vpop.f32.mrf.mxu3  ;;  %118 = vst [vmem:[#allocation3] sm:$0xff] %v116_v40 }
  0xa6   :  { %v103_v44 = vadd.f32 %v102_v42, %v79_v41 }
  0xa8   :  { %v117_v45 = vadd.f32 %v115_v43, %v103_v44 }
  0xaa   :  { %119 = vst [vmem:[#allocation3 + $0x8] sm:$0xff] %v117_v45 }
  0xab   :  { %132 = dma.vmem_to_hbm [thread:$0]  %s125_s5, 256, %s127_s0, [#allocation4], %s200_s10, %s200_s10, %s201_s11  }
  0xac   :  { %197 = dma.done.wait [#allocation4], 256  }
  0xad   :  { %198 = vsyncadd [#allocation4], 4294967040 }
  0xae   :  { %137 = vsyncpa [#allocation4], 1 }

</bundles_post_ra>
